<compile_context>
chip_gen: v7x
topology: tpu7x:2x2x1
jax: 0.10.0
libtpu: 0.0.40
codegen_flags: <defaults>
</compile_context>

<pallas_src>
import math

import numpy as np
import jax
import jax.numpy as jnp
from jax.experimental import pallas as pl
from jax.experimental.pallas import tpu as pltpu


def _make_fused_kernel(*, K, B, H, D, half, max_period,
                       adaln_slots, xattn_slots, pooling_mode):
    """Builds the fused per-key (timestep-embedding -> MLP -> pool/scatter) kernel."""
    adaln_set = frozenset(adaln_slots)
    xattn_pos = {key_idx: j for j, key_idx in enumerate(xattn_slots)}
    inv_na = 1.0 / max(len(adaln_slots), 1)
    neg_log_mp_over_half = -math.log(max_period) / half

    def kernel(cond_ref, w1_ref, b12_ref, w2_ref, *out_refs):
        # cond_ref: (K, B)        f32  in SMEM (scalar condition values)
        # w1_ref:   (K, F, H)     bf16 (rows ordered [cos-half ; sin-half])
        # b12_ref:  (K, 1, H+D)   bf16 (b1 | b2 packed along lanes)
        # w2_ref:   (K, H, D)     bf16
        # out_refs: [adaln (B, D) f32]? [crossattn (B, Nc*D) f32]?
        refs = list(out_refs)
        adaln_ref = refs.pop(0) if adaln_slots else None
        xattn_ref = refs.pop(0) if xattn_slots else None

        # Sinusoid frequency table built on-chip (VPU iota + EUP exp): saves an
        # HBM->VMEM input stream.  freqs[i] = exp(-log(max_period) * i / half).
        lane = jax.lax.broadcasted_iota(jnp.int32, (1, half), 1).astype(jnp.float32)
        freqs = jnp.exp(lane * neg_log_mp_over_half)                  # [1, half] f32

        # Sublane-id mask used to splat per-batch SMEM scalars into their rows.
        row_ids = jax.lax.broadcasted_iota(jnp.int32, (B, half), 0)   # [B, half]

        adaln_acc = None
        for k in range(K):                       # K is tiny -> static unroll
            # args[b, :] = cond[k, b] * freqs   (scalar from SMEM, B cheap selects)
            t = jnp.zeros((B, half), jnp.float32)
            for b in range(B):
                t = jnp.where(row_ids == b, cond_ref[k, b], t)
            args = t * freqs                                          # [B, half] f32

            # timestep_embedding = concat(cos, sin); instead of materializing the
            # concat we use the two sublane-aligned row-halves of w1 (views).
            cos_e = jnp.cos(args).astype(jnp.bfloat16)                # [B, half]
            sin_e = jnp.sin(args).astype(jnp.bfloat16)                # [B, half]
            w1k = w1_ref[k]                                           # [F, H] bf16
            b12k = b12_ref[k]                                         # [1, H+D] bf16

            h = (jnp.dot(cos_e, w1k[:half], preferred_element_type=jnp.float32)
                 + jnp.dot(sin_e, w1k[half:], preferred_element_type=jnp.float32)
                 + b12k[:, :H].astype(jnp.float32))                   # [B, H] f32
            h = h * jax.nn.sigmoid(h)                                 # SiLU in f32 (EUP)

            out = (jnp.dot(h.astype(jnp.bfloat16), w2_ref[k],
                           preferred_element_type=jnp.float32)
                   + b12k[:, H:].astype(jnp.float32))                 # [B, D] f32

            if k in adaln_set:
                adaln_acc = out if adaln_acc is None else adaln_acc + out
            if k in xattn_pos:
                j = xattn_pos[k]
                # Lane-aligned slab write (j*D is a static multiple of D).
                xattn_ref[:, j * D:(j + 1) * D] = out.astype(xattn_ref.dtype)

        if adaln_ref is not None:
            pooled = adaln_acc * inv_na if pooling_mode == "mean" else adaln_acc
            adaln_ref[...] = pooled.astype(adaln_ref.dtype)

    return kernel


def pack_micro_conditioner_params(w1, b1, w2, b2):
    """Pack per-key MLP params for the kernel.  Do this ONCE at model setup.

    w1: [K, F, H] (= torch fc1.weight.T; rows ordered [cos-half ; sin-half])
    b1: [K, H]    w2: [K, H, D] (= torch fc2.weight.T)    b2: [K, D]
    Returns (w1 bf16 [K,F,H], b12 bf16 [K,1,H+D], w2 bf16 [K,H,D]).
    """
    K, _, H = w1.shape
    D = w2.shape[2]
    b12 = jnp.concatenate([b1.reshape(K, 1, H), b2.reshape(K, 1, D)], axis=-1)
    return (w1.astype(jnp.bfloat16), b12.astype(jnp.bfloat16), w2.astype(jnp.bfloat16))


def resolve_condition_values(cond_dict, all_keys, batch_size, defaults=None):
    """Resolve per-key condition values (dict / scalar defaults) to a [K, B] f32 array."""
    defaults = defaults or {}
    rows = []
    for key in all_keys:
        cond = cond_dict.get(key, defaults.get(key))
        if cond is None:
            # TODO(synk): null_cond_embeddings / classifier-free dropout path.
            raise ValueError(f"Condition key {key} not found and no default given.")
        if isinstance(cond, (int, float)):
            cond = jnp.full((batch_size,), float(cond), dtype=jnp.float32)
        rows.append(jnp.asarray(cond, dtype=jnp.float32).reshape(batch_size))
    return jnp.stack(rows, axis=0)


def micro_conditioner_forward(cond_vals, w1, b12, w2, *, all_keys, adaln_keys,
                              crossattn_keys, pooling_mode="mean",
                              max_period=10000.0):
    """Fused MicroConditioner.forward (eval mode).

    cond_vals: [K, B] f32 (K = len(all_keys), sorted-key order)
    w1 [K,F,H] / b12 [K,1,H+D] / w2 [K,H,D] from pack_micro_conditioner_params.
    Returns (adaln_conditions [B, D] or None, crossattn_conditions [B, Nc, D] or None).
    """
    if pooling_mode not in ("mean", "sum"):
        raise NotImplementedError("'mlp' adaln pooling not implemented")  # TODO(synk)
    K, B = cond_vals.shape
    _, F, H = w1.shape
    D = w2.shape[2]
    assert F % 2 == 0, "frequency_embedding_size must be even"
    assert b12.shape == (K, 1, H + D), b12.shape
    half = F // 2

    # Slot order follows the sorted all_keys iteration (matches the torch forward).
    adaln_slots = tuple(i for i, k in enumerate(all_keys) if k in adaln_keys)
    xattn_slots = tuple(i for i, k in enumerate(all_keys) if k in crossattn_keys)
    Na, Nc = len(adaln_slots), len(xattn_slots)
    assert Na + Nc > 0, "No condition keys provided"

    out_shapes, out_specs = [], []
    if Na:
        out_shapes.append(jax.ShapeDtypeStruct((B, D), jnp.float32))
        out_specs.append(pl.BlockSpec((B, D), lambda i: (0, 0)))
    if Nc:
        out_shapes.append(jax.ShapeDtypeStruct((B, Nc * D), jnp.float32))
        out_specs.append(pl.BlockSpec((B, Nc * D), lambda i: (0, 0)))

    kernel = _make_fused_kernel(K=K, B=B, H=H, D=D, half=half, max_period=max_period,
                                adaln_slots=adaln_slots, xattn_slots=xattn_slots,
                                pooling_mode=pooling_mode)

    # Single collapsed grid step: all keys' weights resident in VMEM (~0.8 MB bf16,
    # ~1.6 MB double-buffered -- far under every chip's VMEM limit).  No per-step
    # overhead, no pipeline bubbles.  If K grows beyond ~4, switch to grid=(K,)
    # with "arbitrary" so key k+1's weight DMA overlaps key k's MXU streaming.
    outs = pl.pallas_call(
        kernel,
        out_shape=tuple(out_shapes),
        grid_spec=pltpu.PrefetchScalarGridSpec(
            num_scalar_prefetch=0,
            grid=(1,),
            in_specs=[
                pl.BlockSpec(memory_space=pltpu.MemorySpace.SMEM),      # cond [K, B]
                pl.BlockSpec((K, F, H), lambda i: (0, 0, 0)),           # w1
                pl.BlockSpec((K, 1, H + D), lambda i: (0, 0, 0)),       # b1|b2 packed
                pl.BlockSpec((K, H, D), lambda i: (0, 0, 0)),           # w2
            ],
            out_specs=tuple(out_specs),
        ),
        compiler_params=pltpu.CompilerParams(dimension_semantics=("arbitrary",)),
    )(cond_vals.astype(jnp.float32), w1.astype(jnp.bfloat16),
      b12.astype(jnp.bfloat16), w2.astype(jnp.bfloat16))

    if not isinstance(outs, (tuple, list)):
        outs = (outs,)
    outs = list(outs)
    adaln = outs.pop(0) if Na else None
    # Row-major [B, Nc*D] -> [B, Nc, D] is a metadata-only reshape (no dispatch cost).
    crossattn = outs.pop(0).reshape(B, Nc, D) if Nc else None
    return adaln, crossattn


def _reference_forward(cond_vals, all_keys, adaln_keys, crossattn_keys,
                       w1, b1, w2, b2, half, max_period, pooling_mode):
    """Pure-JAX f32 reference replicating the PyTorch forward semantics."""
    freqs = jnp.exp(-math.log(max_period) *
                    jnp.arange(half, dtype=jnp.float32) / half)
    adaln_list, xattn_list = [], []
    for i, key in enumerate(all_keys):
        t = cond_vals[i]                                   # [B]
        args = t[:, None] * freqs[None, :]
        emb = jnp.concatenate([jnp.cos(args), jnp.sin(args)], axis=-1)
        h = jax.nn.silu(emb @ w1[i] + b1[i])
        out = h @ w2[i] + b2[i]
        if key in adaln_keys:
            adaln_list.append(out)
        if key in crossattn_keys:
            xattn_list.append(out)
    adaln = None
    if adaln_list:
        stacked = jnp.stack(adaln_list, axis=1)
        adaln = jnp.mean(stacked, 1) if pooling_mode == "mean" else jnp.sum(stacked, 1)
    crossattn = jnp.stack(xattn_list, axis=1) if xattn_list else None
    return adaln, crossattn


if __name__ == "__main__":
    # Module config (small but lane/MXU friendly).
    B = 2                    # batch
    F = 256                  # frequency_embedding_size
    H = 512                  # hidden_dim
    D = 128                  # out_dim
    MAX_PERIOD = 10000.0

    adaln_keys = ("aspect_ratio", "fps")
    crossattn_keys = ("fps",)
    all_keys = tuple(sorted(set(adaln_keys + crossattn_keys)))   # ('aspect_ratio', 'fps')
    K = len(all_keys)

    # Deterministic parameter init (NOTE: the real module zero-inits mlp[2]; we use
    # small random weights so the compute path is actually exercised).
    key = jax.random.PRNGKey(0)
    k1, k2, k3, k4 = jax.random.split(key, 4)
    w1_f32 = jax.random.normal(k1, (K, F, H), dtype=jnp.float32) * (1.0 / math.sqrt(F))
    b1_f32 = jax.random.normal(k2, (K, H), dtype=jnp.float32) * 0.01
    w2_f32 = jax.random.normal(k3, (K, H, D), dtype=jnp.float32) * (1.0 / math.sqrt(H))
    b2_f32 = jax.random.normal(k4, (K, D), dtype=jnp.float32) * 0.01

    # Pack ONCE at setup: bf16 weight streams + packed bias stream.
    w1, b12, w2 = pack_micro_conditioner_params(w1_f32, b1_f32, w2_f32, b2_f32)

    # Scalar conditions: fps given per-batch, aspect_ratio via module defaults.
    cond_dict = {"fps": jnp.array([24.0, 30.0], dtype=jnp.float32)}
    defaults = {"aspect_ratio": 1.778}
    cond_vals = resolve_condition_values(cond_dict, all_keys, B, defaults)   # [K, B]

    for mode in ("mean", "sum"):
        adaln, crossattn = micro_conditioner_forward(
            cond_vals, w1, b12, w2, all_keys=all_keys, adaln_keys=adaln_keys,
            crossattn_keys=crossattn_keys, pooling_mode=mode, max_period=MAX_PERIOD)
        adaln = jax.block_until_ready(adaln)
        crossattn = jax.block_until_ready(crossattn)

        adaln_ref, crossattn_ref = _reference_forward(
            cond_vals, all_keys, adaln_keys, crossattn_keys,
            w1_f32, b1_f32, w2_f32, b2_f32, F // 2, MAX_PERIOD, mode)

        assert adaln.shape == (B, D), adaln.shape
        assert crossattn.shape == (B, len(crossattn_keys), D), crossattn.shape
        # bf16 weight/activation streaming (f32 accumulation) vs. pure f32 reference.
        np.testing.assert_allclose(np.asarray(adaln), np.asarray(adaln_ref),
                                   rtol=2e-2, atol=2e-2)
        np.testing.assert_allclose(np.asarray(crossattn), np.asarray(crossattn_ref),
                                   rtol=2e-2, atol=2e-2)

    print("KERNEL_OK")
</pallas_src>

<mosaic_0001>
module attributes {stable_mosaic.version = 11 : i64} {
  func.func @kernel(%arg0: i32, %arg1: memref<2x2xf32, #tpu.memory_space<smem>>, %arg2: memref<2x256x512xbf16, #tpu.memory_space<vmem>>, %arg3: memref<2x1x640xbf16, #tpu.memory_space<vmem>>, %arg4: memref<2x512x128xbf16, #tpu.memory_space<vmem>>, %arg5: memref<2x128xf32, #tpu.memory_space<vmem>>, %arg6: memref<2x128xf32, #tpu.memory_space<vmem>>) attributes {dimension_semantics = [#tpu.dimension_semantics<arbitrary>], iteration_bounds = array<i64: 1>, scalar_prefetch = 0 : i64, scratch_operands = 0 : i64, tpu.core_type = #tpu.core_type<tc>, window_params = [{transform_indices = @transform_0, window_bounds = array<i64: 2, 2>}, {pipeline_mode = #tpu.pipeline_mode<synchronous>, transform_indices = @transform_1, window_bounds = array<i64: 2, 256, 512>}, {pipeline_mode = #tpu.pipeline_mode<synchronous>, transform_indices = @transform_2, window_bounds = array<i64: 2, 1, 640>}, {pipeline_mode = #tpu.pipeline_mode<synchronous>, transform_indices = @transform_3, window_bounds = array<i64: 2, 512, 128>}, {pipeline_mode = #tpu.pipeline_mode<synchronous>, transform_indices = @transform_4, window_bounds = array<i64: 2, 128>}, {pipeline_mode = #tpu.pipeline_mode<synchronous>, transform_indices = @transform_5, window_bounds = array<i64: 2, 128>}]} {
    %0 = tpu.iota {dimensions = array<i32: 1>} : vector<1x128xi32>
    %1 = arith.sitofp %0 : vector<1x128xi32> to vector<1x128xf32>
    %cst = arith.constant -0.0719557852 : f32
    %2 = vector.broadcast %cst : f32 to vector<1x128xf32>
    %3 = arith.mulf %1, %2 : vector<1x128xf32>
    %4 = math.exp %3 : vector<1x128xf32>
    %5 = tpu.iota {dimensions = array<i32: 0>} : vector<2x128xi32>
    %cst_0 = arith.constant 0.000000e+00 : f32
    %6 = vector.broadcast %cst_0 : f32 to vector<2x128xf32>
    %c0_i32 = arith.constant 0 : i32
    %7 = vector.broadcast %c0_i32 : i32 to vector<2x128xi32>
    %8 = arith.cmpi eq, %5, %7 : vector<2x128xi32>
    %c0 = arith.constant 0 : index
    %c0_1 = arith.constant 0 : index
    %9 = memref.load %arg1[%c0, %c0_1] : memref<2x2xf32, #tpu.memory_space<smem>>
    %10 = vector.broadcast %9 : f32 to vector<2x128xf32>
    %11 = arith.select %8, %10, %6 : vector<2x128xi1>, vector<2x128xf32>
    %c1_i32 = arith.constant 1 : i32
    %12 = vector.broadcast %c1_i32 : i32 to vector<2x128xi32>
    %13 = arith.cmpi eq, %5, %12 : vector<2x128xi32>
    %c0_2 = arith.constant 0 : index
    %c1 = arith.constant 1 : index
    %14 = memref.load %arg1[%c0_2, %c1] : memref<2x2xf32, #tpu.memory_space<smem>>
    %15 = vector.broadcast %14 : f32 to vector<2x128xf32>
    %16 = arith.select %13, %15, %11 : vector<2x128xi1>, vector<2x128xf32>
    %17 = vector.broadcast %4 : vector<1x128xf32> to vector<2x128xf32>
    %18 = arith.mulf %16, %17 : vector<2x128xf32>
    %19 = math.cos %18 : vector<2x128xf32>
    %20 = arith.truncf %19 : vector<2x128xf32> to vector<2x128xbf16>
    %21 = math.sin %18 : vector<2x128xf32>
    %22 = arith.truncf %21 : vector<2x128xf32> to vector<2x128xbf16>
    %c0_3 = arith.constant 0 : index
    %c0_4 = arith.constant 0 : index
    %c0_5 = arith.constant 0 : index
    %23 = vector.load %arg2[%c0_3, %c0_4, %c0_5] : memref<2x256x512xbf16, #tpu.memory_space<vmem>>, vector<1x256x512xbf16>
    %24 = vector.shape_cast %23 : vector<1x256x512xbf16> to vector<256x512xbf16>
    %c0_6 = arith.constant 0 : index
    %c0_7 = arith.constant 0 : index
    %c0_8 = arith.constant 0 : index
    %25 = vector.load %arg3[%c0_6, %c0_7, %c0_8] : memref<2x1x640xbf16, #tpu.memory_space<vmem>>, vector<1x1x640xbf16>
    %26 = vector.shape_cast %25 : vector<1x1x640xbf16> to vector<1x640xbf16>
    %27 = vector.extract_strided_slice %24 {offsets = [0, 0], sizes = [128, 512], strides = [1, 1]} : vector<256x512xbf16> to vector<128x512xbf16>
    %cst_9 = arith.constant dense<0.000000e+00> : vector<2x512xf32>
    %28 = tpu.matmul %20, %27, %cst_9 {dimension_numbers = #tpu.dot_dimension_numbers<[1], [0], [0], [1], [0, 0, 1, 1], [], []>} : vector<2x128xbf16>, vector<128x512xbf16>, vector<2x512xf32> -> vector<2x512xf32>
    %29 = vector.extract_strided_slice %24 {offsets = [128, 0], sizes = [128, 512], strides = [1, 1]} : vector<256x512xbf16> to vector<128x512xbf16>
    %cst_10 = arith.constant dense<0.000000e+00> : vector<2x512xf32>
    %30 = tpu.matmul %22, %29, %cst_10 {dimension_numbers = #tpu.dot_dimension_numbers<[1], [0], [0], [1], [0, 0, 1, 1], [], []>} : vector<2x128xbf16>, vector<128x512xbf16>, vector<2x512xf32> -> vector<2x512xf32>
    %31 = arith.addf %28, %30 : vector<2x512xf32>
    %32 = vector.extract_strided_slice %26 {offsets = [0, 0], sizes = [1, 512], strides = [1, 1]} : vector<1x640xbf16> to vector<1x512xbf16>
    %33 = arith.extf %32 : vector<1x512xbf16> to vector<1x512xf32>
    %34 = vector.broadcast %33 : vector<1x512xf32> to vector<2x512xf32>
    %35 = arith.addf %31, %34 : vector<2x512xf32>
    %36 = arith.negf %35 : vector<2x512xf32>
    %37 = math.exp %36 : vector<2x512xf32>
    %cst_11 = arith.constant 1.000000e+00 : f32
    %38 = vector.broadcast %cst_11 : f32 to vector<2x512xf32>
    %39 = arith.addf %38, %37 : vector<2x512xf32>
    %40 = arith.divf %38, %39 : vector<2x512xf32>
    %41 = arith.mulf %35, %40 : vector<2x512xf32>
    %42 = arith.truncf %41 : vector<2x512xf32> to vector<2x512xbf16>
    %c0_12 = arith.constant 0 : index
    %c0_13 = arith.constant 0 : index
    %c0_14 = arith.constant 0 : index
    %43 = vector.load %arg4[%c0_12, %c0_13, %c0_14] : memref<2x512x128xbf16, #tpu.memory_space<vmem>>, vector<1x512x128xbf16>
    %44 = vector.shape_cast %43 : vector<1x512x128xbf16> to vector<512x128xbf16>
    %cst_15 = arith.constant dense<0.000000e+00> : vector<2x128xf32>
    %45 = tpu.matmul %42, %44, %cst_15 {dimension_numbers = #tpu.dot_dimension_numbers<[1], [0], [0], [1], [0, 0, 1, 1], [], []>} : vector<2x512xbf16>, vector<512x128xbf16>, vector<2x128xf32> -> vector<2x128xf32>
    %46 = vector.extract_strided_slice %26 {offsets = [0, 512], sizes = [1, 128], strides = [1, 1]} : vector<1x640xbf16> to vector<1x128xbf16>
    %47 = arith.extf %46 : vector<1x128xbf16> to vector<1x128xf32>
    %48 = vector.broadcast %47 : vector<1x128xf32> to vector<2x128xf32>
    %49 = arith.addf %45, %48 : vector<2x128xf32>
    %cst_16 = arith.constant 0.000000e+00 : f32
    %50 = vector.broadcast %cst_16 : f32 to vector<2x128xf32>
    %c0_i32_17 = arith.constant 0 : i32
    %51 = vector.broadcast %c0_i32_17 : i32 to vector<2x128xi32>
    %52 = arith.cmpi eq, %5, %51 : vector<2x128xi32>
    %c1_18 = arith.constant 1 : index
    %c0_19 = arith.constant 0 : index
    %53 = memref.load %arg1[%c1_18, %c0_19] : memref<2x2xf32, #tpu.memory_space<smem>>
    %54 = vector.broadcast %53 : f32 to vector<2x128xf32>
    %55 = arith.select %52, %54, %50 : vector<2x128xi1>, vector<2x128xf32>
    %c1_i32_20 = arith.constant 1 : i32
    %56 = vector.broadcast %c1_i32_20 : i32 to vector<2x128xi32>
    %57 = arith.cmpi eq, %5, %56 : vector<2x128xi32>
    %c1_21 = arith.constant 1 : index
    %c1_22 = arith.constant 1 : index
    %58 = memref.load %arg1[%c1_21, %c1_22] : memref<2x2xf32, #tpu.memory_space<smem>>
    %59 = vector.broadcast %58 : f32 to vector<2x128xf32>
    %60 = arith.select %57, %59, %55 : vector<2x128xi1>, vector<2x128xf32>
    %61 = vector.broadcast %4 : vector<1x128xf32> to vector<2x128xf32>
    %62 = arith.mulf %60, %61 : vector<2x128xf32>
    %63 = math.cos %62 : vector<2x128xf32>
    %64 = arith.truncf %63 : vector<2x128xf32> to vector<2x128xbf16>
    %65 = math.sin %62 : vector<2x128xf32>
    %66 = arith.truncf %65 : vector<2x128xf32> to vector<2x128xbf16>
    %c1_23 = arith.constant 1 : index
    %c0_24 = arith.constant 0 : index
    %c0_25 = arith.constant 0 : index
    %67 = vector.load %arg2[%c1_23, %c0_24, %c0_25] : memref<2x256x512xbf16, #tpu.memory_space<vmem>>, vector<1x256x512xbf16>
    %68 = vector.shape_cast %67 : vector<1x256x512xbf16> to vector<256x512xbf16>
    %c1_26 = arith.constant 1 : index
    %c0_27 = arith.constant 0 : index
    %c0_28 = arith.constant 0 : index
    %69 = vector.load %arg3[%c1_26, %c0_27, %c0_28] : memref<2x1x640xbf16, #tpu.memory_space<vmem>>, vector<1x1x640xbf16>
    %70 = vector.shape_cast %69 : vector<1x1x640xbf16> to vector<1x640xbf16>
    %71 = vector.extract_strided_slice %68 {offsets = [0, 0], sizes = [128, 512], strides = [1, 1]} : vector<256x512xbf16> to vector<128x512xbf16>
    %cst_29 = arith.constant dense<0.000000e+00> : vector<2x512xf32>
    %72 = tpu.matmul %64, %71, %cst_29 {dimension_numbers = #tpu.dot_dimension_numbers<[1], [0], [0], [1], [0, 0, 1, 1], [], []>} : vector<2x128xbf16>, vector<128x512xbf16>, vector<2x512xf32> -> vector<2x512xf32>
    %73 = vector.extract_strided_slice %68 {offsets = [128, 0], sizes = [128, 512], strides = [1, 1]} : vector<256x512xbf16> to vector<128x512xbf16>
    %cst_30 = arith.constant dense<0.000000e+00> : vector<2x512xf32>
    %74 = tpu.matmul %66, %73, %cst_30 {dimension_numbers = #tpu.dot_dimension_numbers<[1], [0], [0], [1], [0, 0, 1, 1], [], []>} : vector<2x128xbf16>, vector<128x512xbf16>, vector<2x512xf32> -> vector<2x512xf32>
    %75 = arith.addf %72, %74 : vector<2x512xf32>
    %76 = vector.extract_strided_slice %70 {offsets = [0, 0], sizes = [1, 512], strides = [1, 1]} : vector<1x640xbf16> to vector<1x512xbf16>
    %77 = arith.extf %76 : vector<1x512xbf16> to vector<1x512xf32>
    %78 = vector.broadcast %77 : vector<1x512xf32> to vector<2x512xf32>
    %79 = arith.addf %75, %78 : vector<2x512xf32>
    %80 = arith.negf %79 : vector<2x512xf32>
    %81 = math.exp %80 : vector<2x512xf32>
    %cst_31 = arith.constant 1.000000e+00 : f32
    %82 = vector.broadcast %cst_31 : f32 to vector<2x512xf32>
    %83 = arith.addf %82, %81 : vector<2x512xf32>
    %84 = arith.divf %82, %83 : vector<2x512xf32>
    %85 = arith.mulf %79, %84 : vector<2x512xf32>
    %86 = arith.truncf %85 : vector<2x512xf32> to vector<2x512xbf16>
    %c1_32 = arith.constant 1 : index
    %c0_33 = arith.constant 0 : index
    %c0_34 = arith.constant 0 : index
    %87 = vector.load %arg4[%c1_32, %c0_33, %c0_34] : memref<2x512x128xbf16, #tpu.memory_space<vmem>>, vector<1x512x128xbf16>
    %88 = vector.shape_cast %87 : vector<1x512x128xbf16> to vector<512x128xbf16>
    %cst_35 = arith.constant dense<0.000000e+00> : vector<2x128xf32>
    %89 = tpu.matmul %86, %88, %cst_35 {dimension_numbers = #tpu.dot_dimension_numbers<[1], [0], [0], [1], [0, 0, 1, 1], [], []>} : vector<2x512xbf16>, vector<512x128xbf16>, vector<2x128xf32> -> vector<2x128xf32>
    %90 = vector.extract_strided_slice %70 {offsets = [0, 512], sizes = [1, 128], strides = [1, 1]} : vector<1x640xbf16> to vector<1x128xbf16>
    %91 = arith.extf %90 : vector<1x128xbf16> to vector<1x128xf32>
    %92 = vector.broadcast %91 : vector<1x128xf32> to vector<2x128xf32>
    %93 = arith.addf %89, %92 : vector<2x128xf32>
    %94 = arith.addf %49, %93 : vector<2x128xf32>
    %c0_36 = arith.constant 0 : index
    %c0_37 = arith.constant 0 : index
    %95 = vector.load %arg6[%c0_36, %c0_37] : memref<2x128xf32, #tpu.memory_space<vmem>>, vector<2x128xf32>
    tpu.vector_store %arg6[%c0_36, %c0_37], %93 {strides = array<i32>} : memref<2x128xf32, #tpu.memory_space<vmem>>, vector<2x128xf32>,
    %cst_38 = arith.constant 5.000000e-01 : f32
    %96 = vector.broadcast %cst_38 : f32 to vector<2x128xf32>
    %97 = arith.mulf %94, %96 : vector<2x128xf32>
    %c0_39 = arith.constant 0 : index
    %c0_40 = arith.constant 0 : index
    %98 = vector.load %arg5[%c0_39, %c0_40] : memref<2x128xf32, #tpu.memory_space<vmem>>, vector<2x128xf32>
    tpu.vector_store %arg5[%c0_39, %c0_40], %97 {strides = array<i32>} : memref<2x128xf32, #tpu.memory_space<vmem>>, vector<2x128xf32>,
    return
  }
  func.func @transform_0(%arg0: i32) -> (i32, i32) {
    %c0_i32 = arith.constant 0 : i32
    %c0_i32_0 = arith.constant 0 : i32
    %c0_i32_1 = arith.constant 0 : i32
    return %c0_i32, %c0_i32_0 : i32, i32
  }
  func.func @transform_1(%arg0: i32) -> (i32, i32, i32) {
    %c0_i32 = arith.constant 0 : i32
    %c0_i32_0 = arith.constant 0 : i32
    %c0_i32_1 = arith.constant 0 : i32
    %c0_i32_2 = arith.constant 0 : i32
    return %c0_i32, %c0_i32_0, %c0_i32_1 : i32, i32, i32
  }
  func.func @transform_2(%arg0: i32) -> (i32, i32, i32) {
    %c0_i32 = arith.constant 0 : i32
    %c0_i32_0 = arith.constant 0 : i32
    %c0_i32_1 = arith.constant 0 : i32
    %c0_i32_2 = arith.constant 0 : i32
    return %c0_i32, %c0_i32_0, %c0_i32_1 : i32, i32, i32
  }
  func.func @transform_3(%arg0: i32) -> (i32, i32, i32) {
    %c0_i32 = arith.constant 0 : i32
    %c0_i32_0 = arith.constant 0 : i32
    %c0_i32_1 = arith.constant 0 : i32
    %c0_i32_2 = arith.constant 0 : i32
    return %c0_i32, %c0_i32_0, %c0_i32_1 : i32, i32, i32
  }
  func.func @transform_4(%arg0: i32) -> (i32, i32) {
    %c0_i32 = arith.constant 0 : i32
    %c0_i32_0 = arith.constant 0 : i32
    %c0_i32_1 = arith.constant 0 : i32
    return %c0_i32, %c0_i32_0 : i32, i32
  }
  func.func @transform_5(%arg0: i32) -> (i32, i32) {
    %c0_i32 = arith.constant 0 : i32
    %c0_i32_0 = arith.constant 0 : i32
    %c0_i32_1 = arith.constant 0 : i32
    return %c0_i32, %c0_i32_0 : i32, i32
  }
}

</mosaic_0001>

<bundles_post_ra>
// kernel: tpu_custom_call.1
= control target key start
LH: loop header
LB: loop body
LE: loop exit
PB: predicated region body
PF: predicated region fallthrough
CT: control target
= control target key end

     0   :  { %11 = vsyncpa [#allocation5], 0  ;;  %s3528_s0 = inlined_call_operand.vmem [shape: f32[2,2], index: 0, kind: input, shape index: {}]   ;;  %s3529_s1 = inlined_call_operand.hbm [shape: bf16[2,256,512], index: 1, kind: input, shape index: {}]   ;;  %s3530_s2 = inlined_call_operand.vmem [shape: bf16[2,1,640], index: 2, kind: input, shape index: {}]   ;;  %s3531_s3 = inlined_call_operand.hbm [shape: bf16[2,512,128], index: 3, kind: input, shape index: {}]   ;;  %s3532_s4 = inlined_call_operand.hbm [shape: f32[2,128], index: 4, kind: output, shape index: {0}]   ;;  %s3533_s5 = inlined_call_operand.hbm [shape: f32[2,128], index: 5, kind: output, shape index: {1}]  }
   0x1   :  { %12 = vsyncpa [#allocation3], 0 }
   0x2   :  { %13 = vsyncpa [#allocation8], 0 }
   0x3   :  { %14 = vsyncpa [#allocation4], 0 }
   0x4   :  { %15 = vsyncpa [#allocation11], 0  ;;  %s22_s20 = sshll.u32 %s3528_s0, 4  ;;  %s23_s20 = int_to_ptr.vmem [resolvable:$true] %s22_s20 }
   0x5   :  { %s3107_s21 = scalar_lea.vmem %s23_s20, 32  ;;  %p3112_p1 = scmp.lt.s32.totalorder %s23_s20, %s23_s20 }
   0x6   :  { %p3108_p0 = scmp.ne.s32.totalorder %s23_s20, %s3107_s21  ;;  %p3113_p2 = scmp.lt.s32.totalorder %s3107_s21, %s3107_s21 }
   0x8   :  { %p3114_p3 = por %p3113_p2, %p3112_p1 }
   0xa   :  { %p3115_p4 = pnand %p3114_p3, %p3108_p0 }
   0xc   :  { %3118 = shalt.err (!%p3115_p4)
}
   0xd   :  { %s3217_s22 = smov [#allocation2]   ;;  %s3218_s23 = smov [#allocation6]  }
   0xe   :  { %25 = dma.vmem_to_smem %s23_s20, 32, %s3217_s22, [#allocation5]  }
   0xf   :  { %s31_s24 = sshll.u32 %s3218_s23, 4  ;;  %s3119_s27 = scalar_lea.hbm %s3529_s1, 16384  ;;  %s32_s24 = int_to_ptr.vmem [resolvable:$true] %s31_s24 }
  0x10   :  { %p3120_p5 = scmp.ne.s32.totalorder %s3529_s1, %s3119_s27  ;;  %p3123_p6 = scmp.lt.u32.totalorder %s3119_s27, %s3529_s1 }
  0x12   :  { %p3125_p7 = pnand %p3123_p6, %p3120_p5 }
  0x14   :  { %3128 = shalt.err (!%p3125_p7)
}
  0x15   :  { %s3129_s6 = scalar_lea.vmem %s32_s24, 16384  ;;  %p3134_p9 = scmp.lt.s32.totalorder %s32_s24, %s32_s24 }
  0x16   :  { %p3130_p8 = scmp.ne.s32.totalorder %s32_s24, %s3129_s6  ;;  %p3135_p10 = scmp.lt.s32.totalorder %s3129_s6, %s3129_s6 }
  0x18   :  { %p3136_p11 = por %p3135_p10, %p3134_p9 }
  0x1a   :  { %p3137_p12 = pnand %p3136_p11, %p3130_p8 }
  0x1c   :  { %3140 = shalt.err (!%p3137_p12)
}
  0x1d   :  { %s3219_s7 = smov 256   ;;  %s3220_s8 = smov 16  }
  0x1e   :  { %37 = dma.hbm_to_vmem [thread:$0]  %s3529_s1, 16384, %s32_s24, [#allocation3], %s3219_s7, %s3219_s7, %s3220_s8  }
  0x1f   :  { %s3221_s11 = smov [#allocation7]   ;;  %s3141_s15 = scalar_lea.hbm %s3531_s3, 8192 }
  0x20   :  { %s45_s12 = sshll.u32 %s3221_s11, 4  ;;  %p3142_p13 = scmp.ne.s32.totalorder %s3531_s3, %s3141_s15  ;;  %s46_s12 = int_to_ptr.vmem [resolvable:$true] %s45_s12 }
  0x21   :  { %p3145_p0 = scmp.lt.u32.totalorder %s3141_s15, %s3531_s3 }
  0x23   :  { %p3147_p1 = pnand %p3145_p0, %p3142_p13 }
  0x25   :  { %3150 = shalt.err (!%p3147_p1)
}
  0x26   :  { %s3151_s20 = scalar_lea.vmem %s46_s12, 8192  ;;  %p3156_p3 = scmp.lt.s32.totalorder %s46_s12, %s46_s12 }
  0x27   :  { %p3152_p2 = scmp.ne.s32.totalorder %s46_s12, %s3151_s20  ;;  %p3157_p4 = scmp.lt.s32.totalorder %s3151_s20, %s3151_s20 }
  0x29   :  { %p3158_p5 = por %p3157_p4, %p3156_p3 }
  0x2b   :  { %p3159_p6 = pnand %p3158_p5, %p3152_p2 }
  0x2d   :  { %3162 = shalt.err (!%p3159_p6)
}
  0x2e   :  { %s3222_s1 = smov 64   ;;  %s3223_s21 = smov 4  }
  0x2f   :  { %51 = dma.hbm_to_vmem [thread:$0]  %s3531_s3, 8192, %s46_s12, [#allocation8], %s3222_s1, %s3222_s1, %s3223_s21  }
  0x30   :  { %3207 = dma.done.wait [#allocation5], 32  }
  0x31   :  { %3208 = vsyncadd [#allocation5], 4294967264 }
  0x32   :  { %3209 = dma.done.wait [#allocation3], 16384  }
  0x33   :  { %3210 = vsyncadd [#allocation3], 4294950912 }
  0x34   :  { %3211 = dma.done.wait [#allocation8], 8192  }
  0x35   :  { %3212 = vsyncadd [#allocation8], 4294959104 }
  0x36   :  { %61 = sfence }
  0x37   :  { %v2809_v0 = vld [vmem:[#allocation6 + $0x104] ss:$16 sps:$4 sm:$0xff]   ;;  %v63_v1 = vlaneseq  ;;  %v2811_v2 = vld [vmem:[#allocation6 + $0x10c] ss:$16 sps:$4 sm:$0xff]   ;;  %v3224_v3 = vmov 0   ;;  %s3292_s3 = sld [smem:[#allocation2]] }
  0x38   :  { %546 = vmatprep.mubr.bf16.mxu0 %v3224_v3  ;;  %587 = vmatprep.mubr.bf16.mxu1 %v3224_v3  ;;  %v2813_v4 = vld [vmem:[#allocation6 + $0x100] ss:$16 sps:$4 sm:$0xff]   ;;  %v2814_v5 = vld [vmem:[#allocation6 + $0x108] ss:$16 sps:$4 sm:$0xff]   ;;  %v2815_v7 = vld [vmem:[#allocation6 + $0x124] ss:$16 sps:$4 sm:$0xff]  }
  0x39   :  { %514 = vmatprep.subr.bf16.mxu0 %v2809_v0  ;;  %v64_v6 = vand.u32 127, %v63_v1  ;;  %555 = vmatprep.subr.bf16.mxu1 %v2811_v2  ;;  %v2817_v8 = vld [vmem:[#allocation6 + $0x12c] ss:$16 sps:$4 sm:$0xff]   ;;  %v2819_v9 = vld [vmem:[#allocation6 + $0x120] ss:$16 sps:$4 sm:$0xff]   ;;  %v3294_v12 = vshrl.u32 %v63_v1, 7 }
  0x3a   :  { %515 = vmatpush1.bf16.msra.mxu0 %v2813_v4  ;;  %556 = vmatpush1.bf16.msra.mxu1 %v2814_v5  ;;  %v2820_v11 = vld [vmem:[#allocation6 + $0x128] ss:$16 sps:$4 sm:$0xff]   ;;  %v2821_v13 = vld [vmem:[#allocation6 + $0x144] ss:$16 sps:$4 sm:$0xff]   ;;  %v2823_v15 = vld [vmem:[#allocation6 + $0x14c] ss:$16 sps:$4 sm:$0xff]  }
  0x3b   :  { %v65_v10 = vcvt.s32.f32 %v64_v6  ;;  %516 = vmatprep.subr.bf16.mxu0 %v2815_v7  ;;  %557 = vmatprep.subr.bf16.mxu1 %v2817_v8  ;;  %v2825_v16 = vld [vmem:[#allocation6 + $0x140] ss:$16 sps:$4 sm:$0xff]   ;;  %v2826_v17 = vld [vmem:[#allocation6 + $0x148] ss:$16 sps:$4 sm:$0xff]   ;;  %v2827_v18 = vld [vmem:[#allocation6 + $0x164] ss:$16 sps:$4 sm:$0xff]  }
  0x3c   :  { %v2829_v20 = vld [vmem:[#allocation6 + $0x16c] ss:$16 sps:$4 sm:$0xff]   ;;  %v2831_v21 = vld [vmem:[#allocation6 + $0x160] ss:$16 sps:$4 sm:$0xff]   ;;  %s2477_s24 = sld [smem:[#allocation2 + $0x1]]  ;;  %vm71_vm0 = vcmp.eq.s32.totalorder %v3294_v12, 0 }
  0x3d   :  { %v66_v14 = vmul.f32 -0.071955785, %v65_v10  ;;  %v2832_v22 = vld [vmem:[#allocation6 + $0x168] ss:$16 sps:$4 sm:$0xff]   ;;  %v2833_v23 = vld [vmem:[#allocation6 + $0x184] ss:$16 sps:$4 sm:$0xff]   ;;  %v73_v24 = vstv %s3292_s3 }
  0x3e   :  { %517 = vmatpush1.bf16.msra.mxu0 %v2819_v9  ;;  %558 = vmatpush1.bf16.msra.mxu1 %v2820_v11  ;;  %v2835_v25 = vld [vmem:[#allocation6 + $0x18c] ss:$16 sps:$4 sm:$0xff]   ;;  %v2837_v26 = vld [vmem:[#allocation6 + $0x180] ss:$16 sps:$4 sm:$0xff]   ;;  %v2838_v27 = vld [vmem:[#allocation6 + $0x188] ss:$16 sps:$4 sm:$0xff]  }
  0x3f   :  { %v67_v19 = vmul.f32 1.442695, %v66_v14  ;;  %518 = vmatprep.subr.bf16.mxu0 %v2821_v13  ;;  %559 = vmatprep.subr.bf16.mxu1 %v2823_v15  ;;  %v74_v28 = vsel %vm71_vm0, %v73_v24, 0.0  ;;  %vm75_vm1 = vcmp.eq.s32.totalorder %v3294_v12, 1  ;;  %v2839_v29 = vld [vmem:[#allocation6 + $0x1a4] ss:$16 sps:$4 sm:$0xff]  }
  0x40   :  { %v2841_v30 = vld [vmem:[#allocation6 + $0x1ac] ss:$16 sps:$4 sm:$0xff]   ;;  %v2843_v33 = vld [vmem:[#allocation6 + $0x1a0] ss:$16 sps:$4 sm:$0xff]   ;;  %v2844_v35 = vld [vmem:[#allocation6 + $0x1a8] ss:$16 sps:$4 sm:$0xff]  }
  0x41   :  { %3065 = vpow2.f32 %v67_v19  ;;  %v2845_v36 = vld [vmem:[#allocation6 + $0x1c4] ss:$16 sps:$4 sm:$0xff]   ;;  %v2847_v37 = vld [vmem:[#allocation6 + $0x1cc] ss:$16 sps:$4 sm:$0xff]   ;;  %v2849_v39 = vld [vmem:[#allocation6 + $0x1c0] ss:$16 sps:$4 sm:$0xff]  }
  0x42   :  { %519 = vmatpush1.bf16.msra.mxu0 %v2825_v16  ;;  %560 = vmatpush1.bf16.msra.mxu1 %v2826_v17  ;;  %v77_v31 = vstv %s2477_s24  ;;  %v2850_v40 = vld [vmem:[#allocation6 + $0x1c8] ss:$16 sps:$4 sm:$0xff]   ;;  %v2851_v42 = vld [vmem:[#allocation6 + $0x1e4] ss:$16 sps:$4 sm:$0xff]   ;;  %v2853_v43 = vld [vmem:[#allocation6 + $0x1ec] ss:$16 sps:$4 sm:$0xff]  }
  0x43   :  { %520 = vmatprep.subr.bf16.mxu0 %v2827_v18  ;;  %561 = vmatprep.subr.bf16.mxu1 %v2829_v20  ;;  %v78_v32 = vsel %vm75_vm1, %v77_v31, %v74_v28  ;;  %v2855_v44 = vld [vmem:[#allocation6 + $0x1e0] ss:$16 sps:$4 sm:$0xff]   ;;  %v2856_v46 = vld [vmem:[#allocation6 + $0x1e8] ss:$16 sps:$4 sm:$0xff]   ;;  %v2859_v48 = vld [vmem:[#allocation6 + $0x4] ss:$16 sps:$4 sm:$0xff]  }
  0x44   :  { %v2862_v50 = vld [vmem:[#allocation6 + $0xc] ss:$16 sps:$4 sm:$0xff]   ;;  %v3225_v58 = vmov 683565275   ;;  %v3226_v60 = vmov 2475754826  }
  0x45   :  { %v3227_v62 = vmov 2131351028   ;;  %v3228_v0 = vmov 2102212464   ;;  %v3229_v2 = vmov 920167782  }
  0x46   :  { %521 = vmatpush1.bf16.msra.mxu0 %v2831_v21  ;;  %562 = vmatpush1.bf16.msra.mxu1 %v2832_v22  ;;  %v3230_v10 = vmov 1326507024   ;;  %s2586_s25 = sld [smem:[#allocation2 + $0x80]]  ;;  %s2587_s26 = sld [smem:[#allocation2 + $0x81]] }
  0x47   :  { %522 = vmatprep.subr.bf16.mxu0 %v2833_v23  ;;  %563 = vmatprep.subr.bf16.mxu1 %v2835_v25  ;;  %s3232_s6 = smov [#allocation9]  }
  0x48   :  { %s2452_s7 = sshll.u32 %s3232_s6, 4  ;;  %s2453_s7 = int_to_ptr.vmem [resolvable:$true] %s2452_s7 }
  0x4a   :  { %523 = vmatpush1.bf16.msra.mxu0 %v2837_v26  ;;  %564 = vmatpush1.bf16.msra.mxu1 %v2838_v27 }
  0x4b   :  { %v3303_v34 = vpop.eup %3065  ;;  %524 = vmatprep.subr.bf16.mxu0 %v2839_v29  ;;  %565 = vmatprep.subr.bf16.mxu1 %v2841_v30 }
  0x4c   :  { %v3306_v38 = vmul.f32 %v3303_v34, %v78_v32 }
  0x4e   :  { %525 = vmatpush1.bf16.msra.mxu0 %v2843_v33  ;;  %566 = vmatpush1.bf16.msra.mxu1 %v2844_v35  ;;  %v83_v41 = vand.u32 2139095040, %v3306_v38  ;;  %v80_v47 = vand.u32 2147483647, %v3306_v38  ;;  %vm82_vm9 = vcmp.lt.s32.totalorder %v3306_v38, 0  ;;  %vm172_vm14 = vweird.f32 %v3306_v38 }
  0x4f   :  { %526 = vmatprep.subr.bf16.mxu0 %v2845_v36  ;;  %567 = vmatprep.subr.bf16.mxu1 %v2847_v37 }
  0x50   :  { %v84_v45 = vshrl.u32 %v83_v41, 23  ;;  %v87_v52 = vand.u32 8388607, %v80_v47  ;;  %vm81_vm10 = vcmp.le.f32.partialorder %v80_v47, 0.7853982 }
  0x52   :  { %527 = vmatpush1.bf16.msra.mxu0 %v2849_v39  ;;  %568 = vmatpush1.bf16.msra.mxu1 %v2850_v40  ;;  %v2478_v49 = vadd.s32 4294967169, %v84_v45  ;;  %v88_v55 = vor.u32 8388608, %v87_v52 }
  0x53   :  { %528 = vmatprep.subr.bf16.mxu0 %v2851_v42  ;;  %569 = vmatprep.subr.bf16.mxu1 %v2853_v43 }
  0x54   :  { %v90_v51 = vadd.s32 1, %v2478_v49  ;;  %v128_v13 = vshll.u32 %v88_v55, 8 }
  0x56   :  { %529 = vmatpush1.bf16.msra.mxu0 %v2855_v44  ;;  %570 = vmatpush1.bf16.msra.mxu1 %v2856_v46  ;;  %vm91_vm2 = vcmp.gt.s32.totalorder %v90_v51, 0 }
  0x57   :  { %756 = vmatprep.subr.bf16.mxu0 %v2859_v48  ;;  %797 = vmatprep.subr.bf16.mxu1 %v2862_v50  ;;  %v92_v53 = vsel %vm91_vm2, %v90_v51, 0 }
  0x58   :  { %v94_v54 = vand.u32 31, %v92_v53  ;;  %v93_v56 = vshrl.u32 %v92_v53, 5 }
  0x5a   :  { %v95_v57 = vsub.s32 32, %v94_v54  ;;  %v97_v59 = vshll.u32 %v3225_v58, %v94_v54  ;;  %v100_v61 = vshll.u32 %v3226_v60, %v94_v54  ;;  %v103_v63 = vshll.u32 %v3227_v62, %v94_v54 }
  0x5b   :  { %v106_v1 = vshll.u32 %v3228_v0, %v94_v54  ;;  %v109_v4 = vshll.u32 %v3229_v2, %v94_v54  ;;  %vm112_vm3 = vcmp.lt.s32.totalorder %v93_v56, 1  ;;  %vm115_vm4 = vcmp.lt.s32.totalorder %v93_v56, 4 }
  0x5c   :  { %v96_v5 = vshrl.u32 %v3225_v58, %v95_v57  ;;  %v98_v6 = vshrl.u32 %v3226_v60, %v95_v57  ;;  %v101_v7 = vshrl.u32 %v3227_v62, %v95_v57  ;;  %v104_v8 = vshrl.u32 %v3228_v0, %v95_v57 }
  0x5d   :  { %v107_v9 = vshrl.u32 %v3229_v2, %v95_v57  ;;  %v110_v11 = vshrl.u32 %v3230_v10, %v95_v57  ;;  %vm113_vm5 = vcmp.lt.s32.totalorder %v93_v56, 2  ;;  %vm114_vm6 = vcmp.lt.s32.totalorder %v93_v56, 3 }
  0x5e   :  { %v99_v14 = vor.u32 %v98_v6, %v97_v59  ;;  %v102_v15 = vor.u32 %v101_v7, %v100_v61  ;;  %v105_v16 = vor.u32 %v104_v8, %v103_v63 }
  0x5f   :  { %v108_v17 = vor.u32 %v107_v9, %v106_v1  ;;  %v111_v18 = vor.u32 %v110_v11, %v109_v4 }
  0x60   :  { %v116_v19 = vsel %vm112_vm3, %v96_v5, %v99_v14  ;;  %v117_v20 = vsel %vm115_vm4, %v105_v16, 2102212464  ;;  %v120_v21 = vsel %vm112_vm3, %v99_v14, %v102_v15  ;;  %v124_v22 = vsel %vm112_vm3, %v102_v15, %v105_v16 }
  0x61   :  { %v118_v23 = vsel %vm114_vm6, %v102_v15, %v117_v20  ;;  %v121_v24 = vsel %vm115_vm4, %v108_v17, 920167782  ;;  %v125_v25 = vsel %vm115_vm4, %v111_v18, 1326507024  ;;  %v2860_v20 = vld [vmem:[#allocation6 + $0x8] ss:$16 sps:$4 sm:$0xff]  }
  0x62   :  { %v122_v26 = vsel %vm114_vm6, %v105_v16, %v121_v24  ;;  %v126_v27 = vsel %vm114_vm6, %v108_v17, %v125_v25  ;;  %v119_v28 = vsel %vm113_vm5, %v116_v19, %v118_v23  ;;  %v2857_v19 = vld [vmem:[#allocation6] ss:$16 sps:$4 sm:$0xff]   ;;  %v2865_v23 = vld [vmem:[#allocation6 + $0x24] ss:$16 sps:$4 sm:$0xff]   ;;  %v2868_v24 = vld [vmem:[#allocation6 + $0x2c] ss:$16 sps:$4 sm:$0xff]  }
  0x63   :  { %v123_v29 = vsel %vm113_vm5, %v120_v21, %v122_v26  ;;  %v127_v30 = vsel %vm113_vm5, %v124_v22, %v126_v27  ;;  %v135_v36 = vmul.u32 %v128_v13, %v119_v28  ;;  %v2863_v27 = vld [vmem:[#allocation6 + $0x20] ss:$16 sps:$4 sm:$0xff]   ;;  %v2866_v28 = vld [vmem:[#allocation6 + $0x28] ss:$16 sps:$4 sm:$0xff]  }
  0x64   :  { %v3323_v31 = vmul.u32.u64.low %v128_v13, %v127_v30  ;;  %v3324_v32 = vmul.u32.u64.high %v128_v13, %v127_v30, %v3323_v31  ;;  %v3326_v33 = vmul.u32.u64.low %v128_v13, %v123_v29  ;;  %v3327_v35 = vmul.u32.u64.high %v128_v13, %v123_v29, %v3326_v33  ;;  %v2871_v29 = vld [vmem:[#allocation6 + $0x44] ss:$16 sps:$4 sm:$0xff]   ;;  %v2874_v30 = vld [vmem:[#allocation6 + $0x4c] ss:$16 sps:$4 sm:$0xff]  }
  0x65   :  { %v2869_v31 = vld [vmem:[#allocation6 + $0x40] ss:$16 sps:$4 sm:$0xff]  }
  0x66   :  { %vm137_vm7 = vc.u32 %v3324_v32, %v3326_v33  ;;  %v138_v37 = vadd.s32 1, %v3327_v35  ;;  %v136_v50 = vadd.s32 %v3326_v33, %v3324_v32  ;;  %v2872_v32 = vld [vmem:[#allocation6 + $0x48] ss:$16 sps:$4 sm:$0xff]   ;;  %v2877_v33 = vld [vmem:[#allocation6 + $0x64] ss:$16 sps:$4 sm:$0xff]  }
  0x68   :  { %v139_v39 = vsel %vm137_vm7, %v138_v37, %v3327_v35  ;;  %v2880_v35 = vld [vmem:[#allocation6 + $0x6c] ss:$16 sps:$4 sm:$0xff]   ;;  %v2878_v37 = vld [vmem:[#allocation6 + $0x68] ss:$16 sps:$4 sm:$0xff]  }
  0x69   :  { %v140_v40 = vadd.s32 %v139_v39, %v135_v36  ;;  %v2875_v36 = vld [vmem:[#allocation6 + $0x60] ss:$16 sps:$4 sm:$0xff]   ;;  %v2883_v39 = vld [vmem:[#allocation6 + $0x84] ss:$16 sps:$4 sm:$0xff]  }
  0x6b   :  { %v141_v41 = vadd.s32 536870912, %v140_v40 }
  0x6d   :  { %v142_v42 = vshrl.u32 %v141_v41, 30 }
  0x6f   :  { %v143_v43 = vshll.u32 %v142_v42, 30  ;;  %v166_v55 = vsub.s32 4, %v142_v42 }
  0x71   :  { %v144_v44 = vsub.s32 %v140_v40, %v143_v43  ;;  %v167_v63 = vsel %vm82_vm9, %v166_v55, %v142_v42  ;;  %v2886_v40 = vld [vmem:[#allocation6 + $0x8c] ss:$16 sps:$4 sm:$0xff]   ;;  %v2881_v42 = vld [vmem:[#allocation6 + $0x80] ss:$16 sps:$4 sm:$0xff]   ;;  %v2884_v43 = vld [vmem:[#allocation6 + $0x88] ss:$16 sps:$4 sm:$0xff]  }
  0x72   :  { %v169_v5 = vsel %vm81_vm10, 0, %v167_v63  ;;  %v2902_v63 = vld [vmem:[#allocation6 + $0xe8] ss:$16 sps:$4 sm:$0xff]  }
  0x73   :  { %v146_v45 = vsub.s32 0, %v144_v44  ;;  %v277_v8 = vadd.s32 3, %v169_v5  ;;  %v173_v41 = vand.u32 3, %v169_v5  ;;  %v2906_v5 = vld [vmem:[#allocation7 + $0xc0] sm:$0xff]  }
  0x75   :  { %v2479_v46 = vmin.u32 %v146_v45, %v144_v44  ;;  %v278_v13 = vand.u32 3, %v277_v8  ;;  %v2892_v45 = vld [vmem:[#allocation6 + $0xac] ss:$16 sps:$4 sm:$0xff]   ;;  %vm175_vm15 = vcmp.eq.s32.totalorder %v173_v41, 0  ;;  %vm178_vm2 = vcmp.eq.s32.totalorder %v173_v41, 2 }
  0x76   :  { %vm174_vm3 = vcmp.lt.s32.totalorder %v173_v41, 2  ;;  %v2910_v8 = vld [vmem:[#allocation7 + $0xc8] sm:$0xff]   ;;  %v2934_v41 = vld [vmem:[#allocation7 + $0xf8] sm:$0xff]  }
  0x77   :  { %v148_v48 = vclz %v2479_v46  ;;  %vm283_vm11 = vcmp.eq.s32.totalorder %v278_v13, 2  ;;  %vm280_vm12 = vcmp.eq.s32.totalorder %v278_v13, 0  ;;  %vm279_vm13 = vcmp.lt.s32.totalorder %v278_v13, 2  ;;  %v2887_v46 = vld [vmem:[#allocation6 + $0xa0] ss:$16 sps:$4 sm:$0xff]  }
  0x78   :  { %v2913_v13 = vld [vmem:[#allocation7 + $0x50] sm:$0xff]  }
  0x79   :  { %v2480_v49 = vadd.s32 4294967294, %v148_v48  ;;  %v2890_v48 = vld [vmem:[#allocation6 + $0xa8] ss:$16 sps:$4 sm:$0xff]  }
  0x7b   :  { %vm2481_vm8 = vcmp.lt.s32.totalorder %v2480_v49, 0 }
  0x7c   :  { %v151_v51 = vsel %vm2481_vm8, 0, %v2480_v49  ;;  %v2895_v49 = vld [vmem:[#allocation6 + $0xc4] ss:$16 sps:$4 sm:$0xff]  }
  0x7d   :  { %v152_v52 = vsub.s32 32, %v151_v51  ;;  %v153_v53 = vshll.u32 %v144_v44, %v151_v51  ;;  %v156_v54 = vsub.s32 4294967266, %v151_v51  ;;  %v2889_v44 = vld [vmem:[#allocation6 + $0xa4] ss:$16 sps:$4 sm:$0xff]  }
  0x7f   :  { %v154_v56 = vshrl.u32 %v136_v50, %v152_v52  ;;  %v157_v57 = vadd.s32 127, %v156_v54  ;;  %v2898_v50 = vld [vmem:[#allocation6 + $0xcc] ss:$16 sps:$4 sm:$0xff]   ;;  %v2896_v54 = vld [vmem:[#allocation6 + $0xc8] ss:$16 sps:$4 sm:$0xff]  }
  0x81   :  { %v155_v59 = vor.u32 %v154_v56, %v153_v53  ;;  %v158_v61 = vshll.u32 %v157_v57, 23  ;;  %v2893_v53 = vld [vmem:[#allocation6 + $0xc0] ss:$16 sps:$4 sm:$0xff]   ;;  %v2901_v56 = vld [vmem:[#allocation6 + $0xe4] ss:$16 sps:$4 sm:$0xff]  }
  0x82   :  { %v2904_v57 = vld [vmem:[#allocation6 + $0xec] ss:$16 sps:$4 sm:$0xff]  }
  0x83   :  { %v159_v1 = vor.u32 4788187, %v158_v61  ;;  %v162_v4 = vcvt.s32.f32 %v155_v59  ;;  %v2899_v61 = vld [vmem:[#allocation6 + $0xe0] ss:$16 sps:$4 sm:$0xff]  }
  0x85   :  { %v160_v6 = vand.u32 2147483647, %v159_v1 }
  0x87   :  { %v163_v7 = vmul.f32 %v162_v4, %v160_v6  ;;  %v2905_v4 = vld [vmem:[#allocation7 + $0x40] sm:$0xff]  }
  0x88   :  { %v2907_v6 = vld [vmem:[#allocation7] sm:$0xff]  }
  0x89   :  { %v164_v9 = vxor.u32 2147483648, %v163_v7 }
  0x8b   :  { %v165_v11 = vsel %vm82_vm9, %v164_v9, %v163_v7  ;;  %v2908_v7 = vld [vmem:[#allocation7 + $0x80] sm:$0xff]   ;;  %v2911_v9 = vld [vmem:[#allocation7 + $0x8] sm:$0xff]  }
  0x8c   :  { %v168_v14 = vsel %vm81_vm10, %v3306_v38, %v165_v11  ;;  %v2909_v38 = vld [vmem:[#allocation7 + $0x48] sm:$0xff]  }
  0x8d   :  { %3067 = vcosq.f32 %v168_v14  ;;  %v2912_v11 = vld [vmem:[#allocation7 + $0x88] sm:$0xff]  }
  0x8e   :  { %3069 = vsinq.f32 %v168_v14  ;;  %v2914_v14 = vld [vmem:[#allocation7 + $0xd0] sm:$0xff]  }
  0x97   :  { %v3337_v15 = vpop.eup %3067 }
  0x98   :  { %v3339_v16 = vpop.eup %3069  ;;  %v179_v47 = vxor.u32 2147483648, %v3337_v15 }
  0x99   :  { %v176_v17 = vxor.u32 2147483648, %v3339_v16 }
  0x9a   :  { %v285_v18 = vsel %vm283_vm11, %v179_v47, %v3339_v16  ;;  %v180_v52 = vsel %vm178_vm2, %v179_v47, %v3339_v16  ;;  %v2916_v16 = vld [vmem:[#allocation7 + $0x90] sm:$0xff]   ;;  %v1257_v47 = vstv %s2586_s25 }
  0x9b   :  { %v282_v21 = vsel %vm280_vm12, %v3337_v15, %v176_v17  ;;  %v177_v51 = vsel %vm175_vm15, %v3337_v15, %v176_v17  ;;  %v2915_v15 = vld [vmem:[#allocation7 + $0x10] sm:$0xff]   ;;  %v2917_v17 = vld [vmem:[#allocation7 + $0x58] sm:$0xff]  }
  0x9c   :  { %v286_v22 = vsel %vm279_vm13, %v282_v21, %v285_v18  ;;  %v181_v55 = vsel %vm174_vm3, %v177_v51, %v180_v52  ;;  %v2918_v18 = vld [vmem:[#allocation7 + $0xd8] sm:$0xff]   ;;  %v1258_v21 = vsel %vm71_vm0, %v1257_v47, 0.0 }
  0x9d   :  { %v287_v25 = vsel %vm172_vm14, nan, %v286_v22  ;;  %v182_v59 = vsel %vm172_vm14, nan, %v181_v55  ;;  %v1260_v22 = vstv %s2587_s26 }
  0x9e   :  { %v288_v26 = vpack.c.bf16 %v287_v25, %v287_v25  ;;  %v183_v1 = vpack.c.bf16 %v182_v59, %v182_v59  ;;  %v2923_v25 = vld [vmem:[#allocation7 + $0x20] sm:$0xff]  }
  0xa0   :  { %547 = vmatmul.mubr.bf16.vlgmr.msra.gmra.mrb[0].mxu0 %v288_v26  ;;  %588 = vmatmul.mubr.bf16.vlgmr.msra.gmra.mrb[0].mxu1 %v288_v26  ;;  %v2924_v26 = vld [vmem:[#allocation7 + $0xa0] sm:$0xff]  }
  0xa1   :  { %757 = vmatpush1.bf16.msra.mxu0 %v2857_v19  ;;  %798 = vmatpush1.bf16.msra.mxu1 %v2860_v20  ;;  %v2919_v19 = vld [vmem:[#allocation7 + $0x18] sm:$0xff]  }
  0xa2   :  { %758 = vmatprep.subr.bf16.mxu0 %v2865_v23  ;;  %799 = vmatprep.subr.bf16.mxu1 %v2868_v24  ;;  %v2920_v20 = vld [vmem:[#allocation7 + $0x98] sm:$0xff]   ;;  %v2921_v23 = vld [vmem:[#allocation7 + $0x60] sm:$0xff]  }
  0xa3   :  { %788 = vmatprep.mubr.bf16.mxu0 %v3224_v3  ;;  %829 = vmatprep.mubr.bf16.mxu1 %v3224_v3  ;;  %v2922_v24 = vld [vmem:[#allocation7 + $0xe0] sm:$0xff]  }
  0xa5   :  { %759 = vmatpush1.bf16.msra.mxu0 %v2863_v27  ;;  %800 = vmatpush1.bf16.msra.mxu1 %v2866_v28  ;;  %v1261_v27 = vsel %vm75_vm1, %v1260_v22, %v1258_v21  ;;  %v2925_v28 = vld [vmem:[#allocation7 + $0x68] sm:$0xff]  }
  0xa6   :  { %760 = vmatprep.subr.bf16.mxu0 %v2871_v29  ;;  %801 = vmatprep.subr.bf16.mxu1 %v2874_v30  ;;  %v2926_v29 = vld [vmem:[#allocation7 + $0xe8] sm:$0xff]  }
  0xa7   :  { %v2927_v30 = vld [vmem:[#allocation7 + $0x28] sm:$0xff]  }
  0xa9   :  { %761 = vmatpush1.bf16.msra.mxu0 %v2869_v31  ;;  %802 = vmatpush1.bf16.msra.mxu1 %v2872_v32  ;;  %v2928_v31 = vld [vmem:[#allocation7 + $0xa8] sm:$0xff]   ;;  %v3363_v32 = vmul.f32 %v3303_v34, %v1261_v27 }
  0xaa   :  { %762 = vmatprep.subr.bf16.mxu0 %v2877_v33  ;;  %803 = vmatprep.subr.bf16.mxu1 %v2880_v35  ;;  %v2929_v33 = vld [vmem:[#allocation7 + $0x70] sm:$0xff]  }
  0xab   :  { %v2930_v35 = vld [vmem:[#allocation7 + $0xf0] sm:$0xff]   ;;  %vm1265_vm9 = vcmp.lt.s32.totalorder %v3363_v32, 0  ;;  %vm1355_vm14 = vweird.f32 %v3363_v32 }
  0xad   :  { %763 = vmatpush1.bf16.msra.mxu0 %v2875_v36  ;;  %804 = vmatpush1.bf16.msra.mxu1 %v2878_v37  ;;  %v2931_v36 = vld [vmem:[#allocation7 + $0x30] sm:$0xff]  }
  0xae   :  { %764 = vmatprep.subr.bf16.mxu0 %v2883_v39  ;;  %805 = vmatprep.subr.bf16.mxu1 %v2886_v40  ;;  %v2932_v37 = vld [vmem:[#allocation7 + $0xb0] sm:$0xff]   ;;  %v1266_v39 = vand.u32 2139095040, %v3363_v32  ;;  %v2933_v40 = vld [vmem:[#allocation7 + $0x78] sm:$0xff]  }
  0xb0   :  { %v1267_v34 = vshrl.u32 %v1266_v39, 23 }
  0xb1   :  { %765 = vmatpush1.bf16.msra.mxu0 %v2881_v42  ;;  %806 = vmatpush1.bf16.msra.mxu1 %v2884_v43  ;;  %v2935_v42 = vld [vmem:[#allocation7 + $0x38] sm:$0xff]  }
  0xb2   :  { %766 = vmatprep.subr.bf16.mxu0 %v2889_v44  ;;  %807 = vmatprep.subr.bf16.mxu1 %v2892_v45  ;;  %v2936_v43 = vld [vmem:[#allocation7 + $0xb8] sm:$0xff]   ;;  %v2939_v44 = vld [vmem:[#allocation6 + $0x304] ss:$16 sps:$4 sm:$0xff]  }
  0xb3   :  { %v2942_v45 = vld [vmem:[#allocation6 + $0x30c] ss:$16 sps:$4 sm:$0xff]  }
  0xb5   :  { %767 = vmatpush1.bf16.msra.mxu0 %v2887_v46  ;;  %808 = vmatpush1.bf16.msra.mxu1 %v2890_v48  ;;  %v2588_v46 = vadd.s32 4294967169, %v1267_v34 }
  0xb6   :  { %768 = vmatprep.subr.bf16.mxu0 %v2895_v49  ;;  %809 = vmatprep.subr.bf16.mxu1 %v2898_v50 }
  0xb7   :  { %v1273_v48 = vadd.s32 1, %v2588_v46  ;;  %v3412_v46 = vsub.s32 0, %v3294_v12 }
  0xb9   :  { %769 = vmatpush1.bf16.msra.mxu0 %v2893_v53  ;;  %810 = vmatpush1.bf16.msra.mxu1 %v2896_v54  ;;  %vm1274_vm0 = vcmp.gt.s32.totalorder %v1273_v48, 0  ;;  %v1263_v54 = vand.u32 2147483647, %v3363_v32 }
  0xba   :  { %770 = vmatprep.subr.bf16.mxu0 %v2901_v56  ;;  %811 = vmatprep.subr.bf16.mxu1 %v2904_v57  ;;  %v1275_v49 = vsel %vm1274_vm0, %v1273_v48, 0 }
  0xbb   :  { %v1277_v50 = vand.u32 31, %v1275_v49  ;;  %v1276_v55 = vshrl.u32 %v1275_v49, 5  ;;  %v850_v49 = vsub.s32 4, %v3294_v12  ;;  %vm3434_vm10 = vcmp.le.f32.partialorder %v1263_v54, 0.7853982 }
  0xbd   :  { %771 = vmatpush1.bf16.msra.mxu0 %v2899_v61  ;;  %812 = vmatpush1.bf16.msra.mxu1 %v2902_v63  ;;  %v1278_v51 = vsub.s32 32, %v1277_v50  ;;  %v1289_v52 = vshll.u32 %v3228_v0, %v1277_v50  ;;  %v1292_v56 = vshll.u32 %v3229_v2, %v1277_v50  ;;  %v1280_v59 = vshll.u32 %v3225_v58, %v1277_v50 }
  0xbe   :  { %2697 = vmatprep.subr.bf16.mxu0 %v2905_v4  ;;  %2719 = vmatprep.subr.bf16.mxu1 %v2906_v5  ;;  %v1283_v63 = vshll.u32 %v3226_v60, %v1277_v50  ;;  %v1286_v4 = vshll.u32 %v3227_v62, %v1277_v50  ;;  %vm1298_vm1 = vcmp.lt.s32.totalorder %v1276_v55, 4  ;;  %vm1295_vm4 = vcmp.lt.s32.totalorder %v1276_v55, 1 }
  0xbf   :  { %v1290_v53 = vshrl.u32 %v3229_v2, %v1278_v51  ;;  %v1293_v57 = vshrl.u32 %v3230_v10, %v1278_v51  ;;  %v1281_v61 = vshrl.u32 %v3226_v60, %v1278_v51  ;;  %v1287_v5 = vshrl.u32 %v3228_v0, %v1278_v51 }
  0xc0   :  { %789 = vmatmul.mubr.bf16.vlgmr.msra.gmra.mrb[4].mxu0 %v183_v1  ;;  %830 = vmatmul.mubr.bf16.vlgmr.msra.gmra.mrb[4].mxu1 %v183_v1  ;;  %v1284_v1 = vshrl.u32 %v3227_v62, %v1278_v51  ;;  %vm1297_vm5 = vcmp.lt.s32.totalorder %v1276_v55, 3  ;;  %vm1296_vm6 = vcmp.lt.s32.totalorder %v1276_v55, 2 }
  0xc1   :  { %2698 = vmatpush3.bf16.msra.mxu0 %v2907_v6  ;;  %2720 = vmatpush3.bf16.msra.mxu1 %v2908_v7  ;;  %v1291_v6 = vor.u32 %v1290_v53, %v1289_v52  ;;  %v1270_v7 = vand.u32 8388607, %v1263_v54  ;;  %v1282_v2 = vor.u32 %v1281_v61, %v1280_v59  ;;  %v854_v52 = vsub.s32 6, %v3294_v12 }
  0xc2   :  { %2699 = vmatprep.subr.bf16.mxu0 %v2909_v38  ;;  %2721 = vmatprep.subr.bf16.mxu1 %v2910_v8  ;;  %v1294_v38 = vor.u32 %v1293_v57, %v1292_v56  ;;  %v1285_v10 = vor.u32 %v1284_v1, %v1283_v63  ;;  %v1288_v8 = vor.u32 %v1287_v5, %v1286_v4 }
  0xc3   :  { %v1271_v60 = vor.u32 8388608, %v1270_v7 }
  0xc4   :  { %v1303_v62 = vsel %vm1295_vm4, %v1282_v2, %v1285_v10  ;;  %v1300_v22 = vsel %vm1298_vm1, %v1288_v8, 2102212464 }
  0xc5   :  { %2700 = vmatpush3.bf16.msra.mxu0 %v2911_v9  ;;  %2722 = vmatpush3.bf16.msra.mxu1 %v2912_v11  ;;  %v1304_v9 = vsel %vm1298_vm1, %v1291_v6, 920167782  ;;  %v1308_v11 = vsel %vm1298_vm1, %v1294_v38, 1326507024 }
  0xc6   :  { %2701 = vmatprep.subr.bf16.mxu0 %v2913_v13  ;;  %2723 = vmatprep.subr.bf16.mxu1 %v2914_v14  ;;  %v1305_v0 = vsel %vm1297_vm5, %v1288_v8, %v1304_v9  ;;  %v1307_v13 = vsel %vm1295_vm4, %v1285_v10, %v1288_v8  ;;  %v1309_v14 = vsel %vm1297_vm5, %v1291_v6, %v1308_v11 }
  0xc7   :  { %v1310_v47 = vsel %vm1296_vm6, %v1307_v13, %v1309_v14 }
  0xc9   :  { %2702 = vmatpush3.bf16.msra.mxu0 %v2915_v15  ;;  %2724 = vmatpush3.bf16.msra.mxu1 %v2916_v16  ;;  %v1311_v15 = vshll.u32 %v1271_v60, 8  ;;  %v1306_v16 = vsel %vm1296_vm6, %v1303_v62, %v1305_v0 }
  0xca   :  { %2703 = vmatprep.subr.bf16.mxu0 %v2917_v17  ;;  %2725 = vmatprep.subr.bf16.mxu1 %v2918_v18 }
  0xcb   :  { %v3387_v17 = vmul.u32.u64.low %v1311_v15, %v1306_v16  ;;  %v3388_v18 = vmul.u32.u64.high %v1311_v15, %v1306_v16, %v3387_v17 }
  0xcd   :  { %2704 = vmatpush3.bf16.msra.mxu0 %v2919_v19  ;;  %2726 = vmatpush3.bf16.msra.mxu1 %v2920_v20  ;;  %v1279_v19 = vshrl.u32 %v3225_v58, %v1278_v51  ;;  %v3392_v20 = vmul.u32.u64.low %v1311_v15, %v1310_v47  ;;  %v3393_v21 = vmul.u32.u64.high %v1311_v15, %v1310_v47, %v3392_v20  ;;  %v846_v51 = vsub.s32 2, %v3294_v12 }
  0xce   :  { %2705 = vmatprep.subr.bf16.mxu0 %v2921_v23  ;;  %2727 = vmatprep.subr.bf16.mxu1 %v2922_v24  ;;  %v1301_v24 = vsel %vm1297_vm5, %v1285_v10, %v1300_v22 }
  0xcf   :  { %v1299_v23 = vsel %vm1295_vm4, %v1279_v19, %v1282_v2  ;;  %vm1320_vm7 = vc.u32 %v3393_v21, %v3387_v17 }
  0xd1   :  { %2706 = vmatpush3.bf16.msra.mxu0 %v2923_v25  ;;  %2728 = vmatpush3.bf16.msra.mxu1 %v2924_v26  ;;  %v1302_v25 = vsel %vm1296_vm6, %v1299_v23, %v1301_v24  ;;  %v1321_v26 = vadd.s32 1, %v3388_v18  ;;  %v1319_v24 = vadd.s32 %v3387_v17, %v3393_v21 }
  0xd2   :  { %2707 = vmatprep.subr.bf16.mxu0 %v2925_v28  ;;  %2729 = vmatprep.subr.bf16.mxu1 %v2926_v29  ;;  %v1318_v27 = vmul.u32 %v1311_v15, %v1302_v25 }
  0xd3   :  { %v1322_v28 = vsel %vm1320_vm7, %v1321_v26, %v3388_v18 }
  0xd4   :  { %v1323_v58 = vadd.s32 %v1322_v28, %v1318_v27 }
  0xd5   :  { %2708 = vmatpush3.bf16.msra.mxu0 %v2927_v30  ;;  %2730 = vmatpush3.bf16.msra.mxu1 %v2928_v31 }
  0xd6   :  { %2709 = vmatprep.subr.bf16.mxu0 %v2929_v33  ;;  %2731 = vmatprep.subr.bf16.mxu1 %v2930_v35  ;;  %v1324_v29 = vadd.s32 536870912, %v1323_v58 }
  0xd9   :  { %2710 = vmatpush3.bf16.msra.mxu0 %v2931_v36  ;;  %2732 = vmatpush3.bf16.msra.mxu1 %v2932_v37 }
  0xda   :  { %2711 = vmatprep.subr.bf16.mxu0 %v2933_v40  ;;  %2733 = vmatprep.subr.bf16.mxu1 %v2934_v41  ;;  %v3403_v41 = vshrl.u32 %v1324_v29, 30 }
  0xdd   :  { %2712 = vmatpush3.bf16.msra.mxu0 %v2935_v42  ;;  %2734 = vmatpush3.bf16.msra.mxu1 %v2936_v43  ;;  %v1326_v42 = vshll.u32 %v3403_v41, 30 }
  0xde   :  { %1699 = vmatprep.subr.bf16.mxu0 %v2939_v44  ;;  %1740 = vmatprep.subr.bf16.mxu1 %v2942_v45  ;;  %v3409_v45 = vld [vmem:[%s3530_s2] sm:$0x1f] }
  0xdf   :  { %v1327_v43 = vsub.s32 %v1323_v58, %v1326_v42  ;;  %v838_v48 = vunpack.c.l.bf16 %v3409_v45 }
  0xe1   :  { %v1329_v34 = vsub.s32 0, %v1327_v43  ;;  %v843_v53 = vrot.slane %v838_v48, %v3412_v46  ;;  %v851_v55 = vrot.slane %v838_v48, %v850_v49  ;;  %v847_v57 = vrot.slane %v838_v48, %v846_v51 }
  0xe2   :  { %v855_v59 = vrot.slane %v838_v48, %v854_v52 }
  0xe3   :  { %v2589_v44 = vmin.u32 %v1329_v34, %v1327_v43  ;;  %v863_v61 = vrot.slane %v843_v53, %v3412_v46  ;;  %v871_v63 = vrot.slane %v851_v55, %v3412_v46  ;;  %v867_v5 = vrot.slane %v847_v57, %v3412_v46 }
  0xe4   :  { %v875_v6 = vrot.slane %v855_v59, %v3412_v46  ;;  %v2993_v59 = vld [vmem:[#allocation6 + $0x224] ss:$16 sps:$4 sm:$0xff]  }
  0xe5   :  { %v1331_v50 = vclz %v2589_v44 }
  0xe7   :  { %v2590_v56 = vadd.s32 4294967294, %v1331_v50 }
  0xe9   :  { %vm2591_vm8 = vcmp.lt.s32.totalorder %v2590_v56, 0 }
  0xea   :  { %v1334_v62 = vsel %vm2591_vm8, 0, %v2590_v56 }
  0xeb   :  { %v1339_v20 = vsub.s32 4294967266, %v1334_v62  ;;  %v1335_v25 = vsub.s32 32, %v1334_v62  ;;  %v1336_v27 = vshll.u32 %v1327_v43, %v1334_v62 }
  0xed   :  { %v1340_v26 = vadd.s32 127, %v1339_v20  ;;  %v1337_v28 = vshrl.u32 %v1319_v24, %v1335_v25  ;;  %v2963_v20 = vld [vmem:[#allocation6 + $0x384] ss:$16 sps:$4 sm:$0xff]  }
  0xef   :  { %v1341_v58 = vshll.u32 %v1340_v26, 23  ;;  %v2961_v26 = vld [vmem:[#allocation6 + $0x380] ss:$16 sps:$4 sm:$0xff]  }
 0x173   :  { %v548_v30 = vpop.f32.mrb[0].mxu0  ;;  %v589_v31 = vpop.f32.mrb[0].mxu1 }
 0x174   :  { %v550_v33 = vpop.f32.mrb[1].mxu0  ;;  %v591_v35 = vpop.f32.mrb[1].mxu1 }
 0x175   :  { %v552_v36 = vpop.f32.mrb[2].mxu0  ;;  %v593_v37 = vpop.f32.mrb[2].mxu1 }
 0x176   :  { %v553_v39 = vpop.f32.mrb[3].mxu0  ;;  %v594_v40 = vpop.f32.mrb[3].mxu1 }
 0x193   :  { %v790_v1 = vpop.f32.mrb[4].mxu0  ;;  %v831_v4 = vpop.f32.mrb[4].mxu1 }
 0x194   :  { %v791_v7 = vadd.f32 %v790_v1, %v548_v30  ;;  %v832_v38 = vadd.f32 %v831_v4, %v589_v31  ;;  %v792_v2 = vpop.f32.mrb[5].mxu0  ;;  %v833_v10 = vpop.f32.mrb[5].mxu1  ;;  %v1338_v30 = vor.u32 %v1337_v28, %v1336_v27  ;;  %v1342_v31 = vor.u32 4788187, %v1341_v58  ;;  %v2937_v4 = vld [vmem:[#allocation6 + $0x300] ss:$16 sps:$4 sm:$0xff]  }
 0x195   :  { %v793_v8 = vadd.f32 %v792_v2, %v550_v33  ;;  %v834_v9 = vadd.f32 %v833_v10, %v591_v35  ;;  %v794_v60 = vpop.f32.mrb[6].mxu0  ;;  %v835_v11 = vpop.f32.mrb[6].mxu1  ;;  %v1349_v2 = vsub.s32 4, %v3403_v41  ;;  %v2964_v27 = vld [vmem:[#allocation6 + $0x388] ss:$16 sps:$4 sm:$0xff]  }
 0x196   :  { %v876_v0 = vadd.f32 %v863_v61, %v791_v7  ;;  %v878_v13 = vadd.f32 %v871_v63, %v832_v38  ;;  %v795_v14 = vpop.f32.mrb[7].mxu0  ;;  %v836_v15 = vpop.f32.mrb[7].mxu1  ;;  %v1343_v34 = vand.u32 2147483647, %v1342_v31  ;;  %v1345_v17 = vcvt.s32.f32 %v1338_v30  ;;  %v2940_v7 = vld [vmem:[#allocation6 + $0x308] ss:$16 sps:$4 sm:$0xff]  }
 0x197   :  { %v877_v16 = vadd.f32 %v867_v5, %v793_v8  ;;  %v879_v47 = vadd.f32 %v875_v6, %v834_v9  ;;  %v2945_v38 = vld [vmem:[#allocation6 + $0x324] ss:$16 sps:$4 sm:$0xff]   ;;  %v2948_v8 = vld [vmem:[#allocation6 + $0x32c] ss:$16 sps:$4 sm:$0xff]   ;;  %v2943_v9 = vld [vmem:[#allocation6 + $0x320] ss:$16 sps:$4 sm:$0xff]   ;;  %v1350_v62 = vsel %vm1265_vm9, %v1349_v2, %v3403_v41 }
 0x198   :  { %v2550_v18 = vmul.f32 -1.442695, %v876_v0  ;;  %v2552_v19 = vmul.f32 -1.442695, %v878_v13  ;;  %v1346_v21 = vmul.f32 %v1345_v17, %v1343_v34  ;;  %v2946_v60 = vld [vmem:[#allocation6 + $0x328] ss:$16 sps:$4 sm:$0xff]  }
 0x199   :  { %v2551_v22 = vmul.f32 -1.442695, %v877_v16  ;;  %v2553_v23 = vmul.f32 -1.442695, %v879_v47  ;;  %v2951_v11 = vld [vmem:[#allocation6 + $0x344] ss:$16 sps:$4 sm:$0xff]  }
 0x19a   :  { %3071 = vpow2.f32 %v2550_v18  ;;  %v1347_v43 = vxor.u32 2147483648, %v1346_v21  ;;  %v3451_v14 = vsel %vm3434_vm10, 0, %v1350_v62  ;;  %v2952_v15 = vld [vmem:[#allocation6 + $0x348] ss:$16 sps:$4 sm:$0xff]   ;;  %v2955_v18 = vld [vmem:[#allocation6 + $0x360] ss:$16 sps:$4 sm:$0xff]  }
 0x19b   :  { %3073 = vpow2.f32 %v2552_v19  ;;  %v1460_v41 = vadd.s32 3, %v3451_v14  ;;  %v2958_v19 = vld [vmem:[#allocation6 + $0x368] ss:$16 sps:$4 sm:$0xff]   ;;  %v2969_v28 = vld [vmem:[#allocation6 + $0x3a4] ss:$16 sps:$4 sm:$0xff]  }
 0x19c   :  { %3075 = vpow2.f32 %v2551_v22  ;;  %v1348_v61 = vsel %vm1265_vm9, %v1347_v43, %v1346_v21  ;;  %v2972_v58 = vld [vmem:[#allocation6 + $0x3ac] ss:$16 sps:$4 sm:$0xff]   ;;  %v2967_v31 = vld [vmem:[#allocation6 + $0x3a0] ss:$16 sps:$4 sm:$0xff]   ;;  %v2981_v34 = vld [vmem:[#allocation6 + $0x3e4] ss:$16 sps:$4 sm:$0xff]  }
 0x19d   :  { %3077 = vpow2.f32 %v2553_v23  ;;  %v1351_v10 = vsel %vm3434_vm10, %v3363_v32, %v1348_v61  ;;  %v2966_v23 = vld [vmem:[#allocation6 + $0x38c] ss:$16 sps:$4 sm:$0xff]   ;;  %v1461_v25 = vand.u32 3, %v1460_v41  ;;  %v2979_v43 = vld [vmem:[#allocation6 + $0x3e0] ss:$16 sps:$4 sm:$0xff]  }
 0x19e   :  { %v2984_v21 = vld [vmem:[#allocation6 + $0x3ec] ss:$16 sps:$4 sm:$0xff]   ;;  %v3017_v62 = vld [vmem:[#allocation6 + $0x2a4] ss:$16 sps:$4 sm:$0xff]  }
 0x19f   :  { %vm1463_vm11 = vcmp.eq.s32.totalorder %v1461_v25, 0  ;;  %vm1466_vm12 = vcmp.eq.s32.totalorder %v1461_v25, 2  ;;  %vm1462_vm13 = vcmp.lt.s32.totalorder %v1461_v25, 2  ;;  %v2996_v61 = vld [vmem:[#allocation6 + $0x22c] ss:$16 sps:$4 sm:$0xff]  }
 0x1a0   :  { %v3008_v2 = vld [vmem:[#allocation6 + $0x26c] ss:$16 sps:$4 sm:$0xff]  }
 0x1a1   :  { %v3032_v25 = vld [vmem:[#allocation6 + $0x2ec] ss:$16 sps:$4 sm:$0xff]  }
 0x1a2   :  { %v3038_v32 = vld [vmem:[#allocation7 + $0x1c8] sm:$0xff]  }
 0x1a4   :  { %v3072_v29 = vpop.eup %3071 }
 0x1a5   :  { %v3074_v33 = vpop.eup %3073  ;;  %v892_v35 = vadd.f32 1.0, %v3072_v29 }
 0x1a6   :  { %v3076_v36 = vpop.eup %3075  ;;  %v894_v37 = vadd.f32 1.0, %v3074_v33  ;;  %v2970_v33 = vld [vmem:[#allocation6 + $0x3a8] ss:$16 sps:$4 sm:$0xff]  }
 0x1a7   :  { %v3078_v39 = vpop.eup %3077  ;;  %3079 = vrcp.f32 %v892_v35  ;;  %v893_v40 = vadd.f32 1.0, %v3076_v36  ;;  %v2975_v35 = vld [vmem:[#allocation6 + $0x3c4] ss:$16 sps:$4 sm:$0xff]   ;;  %v2978_v36 = vld [vmem:[#allocation6 + $0x3cc] ss:$16 sps:$4 sm:$0xff]  }
 0x1a8   :  { %3081 = vrcp.f32 %v894_v37  ;;  %v895_v42 = vadd.f32 1.0, %v3078_v39 }
 0x1a9   :  { %3083 = vrcp.f32 %v893_v40  ;;  %v2973_v40 = vld [vmem:[#allocation6 + $0x3c0] ss:$16 sps:$4 sm:$0xff]  }
 0x1aa   :  { %3085 = vrcp.f32 %v895_v42  ;;  %v2976_v42 = vld [vmem:[#allocation6 + $0x3c8] ss:$16 sps:$4 sm:$0xff]  }
 0x1ab   :  { %3087 = vcosq.f32 %v1351_v10 }
 0x1ac   :  { %3089 = vsinq.f32 %v1351_v10  ;;  %v3003_v10 = vld [vmem:[#allocation6 + $0x260] ss:$16 sps:$4 sm:$0xff]  }
 0x1b1   :  { %v3080_v44 = vpop.eup %3079 }
 0x1b2   :  { %v3082_v48 = vpop.eup %3081  ;;  %v904_v53 = vmul.f32 %v3080_v44, %v876_v0  ;;  %v2954_v0 = vld [vmem:[#allocation6 + $0x34c] ss:$16 sps:$4 sm:$0xff]  }
 0x1b3   :  { %v3084_v50 = vpop.eup %3083  ;;  %v906_v56 = vmul.f32 %v3082_v48, %v878_v13  ;;  %v2949_v13 = vld [vmem:[#allocation6 + $0x340] ss:$16 sps:$4 sm:$0xff]   ;;  %v2982_v48 = vld [vmem:[#allocation6 + $0x3e8] ss:$16 sps:$4 sm:$0xff]  }
 0x1b4   :  { %v3086_v55 = vpop.eup %3085  ;;  %v905_v57 = vmul.f32 %v3084_v50, %v877_v16  ;;  %v908_v5 = vpack.c.bf16 %v904_v53, %v904_v53  ;;  %v2957_v16 = vld [vmem:[#allocation6 + $0x364] ss:$16 sps:$4 sm:$0xff]   ;;  %v2990_v53 = vld [vmem:[#allocation6 + $0x20c] ss:$16 sps:$4 sm:$0xff]  }
 0x1b5   :  { %v907_v63 = vmul.f32 %v3086_v55, %v879_v47  ;;  %v910_v54 = vpack.c.bf16 %v906_v56, %v906_v56  ;;  %v2960_v47 = vld [vmem:[#allocation6 + $0x36c] ss:$16 sps:$4 sm:$0xff]   ;;  %v3454_v22 = vpop.eup %3087  ;;  %v2987_v50 = vld [vmem:[#allocation6 + $0x204] ss:$16 sps:$4 sm:$0xff]   ;;  %v2985_v56 = vld [vmem:[#allocation6 + $0x200] ss:$16 sps:$4 sm:$0xff]  }
 0x1b6   :  { %v909_v1 = vpack.c.bf16 %v905_v57, %v905_v57  ;;  %v3456_v24 = vpop.eup %3089  ;;  %v1362_v30 = vxor.u32 2147483648, %v3454_v22  ;;  %v2988_v57 = vld [vmem:[#allocation6 + $0x208] ss:$16 sps:$4 sm:$0xff]  }
 0x1b7   :  { %v911_v6 = vpack.c.bf16 %v907_v63, %v907_v63  ;;  %v1359_v29 = vxor.u32 2147483648, %v3456_v24  ;;  %v2991_v63 = vld [vmem:[#allocation6 + $0x220] ss:$16 sps:$4 sm:$0xff]  }
 0x1b8   :  { %1208 = vmatprep.mubr.bf16.mxu0 %v909_v1  ;;  %v1468_v39 = vsel %vm1466_vm12, %v1362_v30, %v3456_v24  ;;  %v2994_v1 = vld [vmem:[#allocation6 + $0x228] ss:$16 sps:$4 sm:$0xff]  }
 0x1b9   :  { %1248 = vmatprep.mubr.bf16.mxu1 %v911_v6  ;;  %1209 = vmatmul.mubr.bf16.vlgmr.msra.gmra.mrb[8].mxu0 %v908_v5  ;;  %v1465_v37 = vsel %vm1463_vm11, %v3454_v22, %v1359_v29  ;;  %v3002_v5 = vld [vmem:[#allocation6 + $0x24c] ss:$16 sps:$4 sm:$0xff]   ;;  %v2997_v6 = vld [vmem:[#allocation6 + $0x240] ss:$16 sps:$4 sm:$0xff]  }
 0x1ba   :  { %1249 = vmatmul.mubr.bf16.vlgmr.msra.gmra.mrb[8].mxu1 %v910_v54  ;;  %1700 = vmatpush1.bf16.msra.mxu0 %v2937_v4  ;;  %v1469_v17 = vsel %vm1462_vm13, %v1465_v37, %v1468_v39  ;;  %v2999_v4 = vld [vmem:[#allocation6 + $0x244] ss:$16 sps:$4 sm:$0xff]   ;;  %v3006_v54 = vld [vmem:[#allocation6 + $0x268] ss:$16 sps:$4 sm:$0xff]  }
 0x1bb   :  { %1741 = vmatpush1.bf16.msra.mxu1 %v2940_v7  ;;  %1701 = vmatprep.subr.bf16.mxu0 %v2945_v38  ;;  %v1470_v44 = vsel %vm1355_vm14, nan, %v1469_v17  ;;  %v3000_v7 = vld [vmem:[#allocation6 + $0x248] ss:$16 sps:$4 sm:$0xff]   ;;  %v3005_v38 = vld [vmem:[#allocation6 + $0x264] ss:$16 sps:$4 sm:$0xff]  }
 0x1bc   :  { %1742 = vmatprep.subr.bf16.mxu1 %v2948_v8  ;;  %1731 = vmatprep.mubr.bf16.mxu0 %v3224_v3  ;;  %v1471_v55 = vpack.c.bf16 %v1470_v44, %v1470_v44  ;;  %v3011_v8 = vld [vmem:[#allocation6 + $0x284] ss:$16 sps:$4 sm:$0xff]   ;;  %v3047_v17 = vld [vmem:[#allocation7 + $0x118] sm:$0xff]  }
 0x1bd   :  { %1772 = vmatprep.mubr.bf16.mxu1 %v3224_v3  ;;  %v3042_v37 = vld [vmem:[#allocation7 + $0x1d0] sm:$0xff]   ;;  %v3050_v44 = vld [vmem:[#allocation7 + $0x1e0] sm:$0xff]  }
 0x1be   :  { %1702 = vmatpush1.bf16.msra.mxu0 %v2943_v9  ;;  %v3014_v9 = vld [vmem:[#allocation6 + $0x28c] ss:$16 sps:$4 sm:$0xff]   ;;  %v3043_v39 = vld [vmem:[#allocation7 + $0x110] sm:$0xff]  }
 0x1bf   :  { %1743 = vmatpush1.bf16.msra.mxu1 %v2946_v60  ;;  %1703 = vmatprep.subr.bf16.mxu0 %v2951_v11  ;;  %v1356_v60 = vand.u32 3, %v3451_v14  ;;  %v3012_v11 = vld [vmem:[#allocation6 + $0x288] ss:$16 sps:$4 sm:$0xff]  }
 0x1c0   :  { %1744 = vmatprep.subr.bf16.mxu1 %v2954_v0  ;;  %v3020_v0 = vld [vmem:[#allocation6 + $0x2ac] ss:$16 sps:$4 sm:$0xff]  }
 0x1c1   :  { %vm1358_vm15 = vcmp.eq.s32.totalorder %v1356_v60, 0  ;;  %vm1361_vm2 = vcmp.eq.s32.totalorder %v1356_v60, 2  ;;  %vm1357_vm3 = vcmp.lt.s32.totalorder %v1356_v60, 2 }
 0x1c2   :  { %1704 = vmatpush1.bf16.msra.mxu0 %v2949_v13  ;;  %v3015_v13 = vld [vmem:[#allocation6 + $0x2a0] ss:$16 sps:$4 sm:$0xff]   ;;  %v1360_v14 = vsel %vm1358_vm15, %v3454_v22, %v1359_v29  ;;  %v1363_v41 = vsel %vm1361_vm2, %v1362_v30, %v3456_v24 }
 0x1c3   :  { %1745 = vmatpush1.bf16.msra.mxu1 %v2952_v15  ;;  %1705 = vmatprep.subr.bf16.mxu0 %v2957_v16  ;;  %v3018_v15 = vld [vmem:[#allocation6 + $0x2a8] ss:$16 sps:$4 sm:$0xff]   ;;  %v3023_v16 = vld [vmem:[#allocation6 + $0x2c4] ss:$16 sps:$4 sm:$0xff]  }
 0x1c4   :  { %1746 = vmatprep.subr.bf16.mxu1 %v2960_v47  ;;  %v3026_v47 = vld [vmem:[#allocation6 + $0x2cc] ss:$16 sps:$4 sm:$0xff]   ;;  %v3033_v24 = vld [vmem:[#allocation7 + $0x140] sm:$0xff]  }
 0x1c5   :  { %v3035_v29 = vld [vmem:[#allocation7 + $0x100] sm:$0xff]  }
 0x1c6   :  { %1706 = vmatpush1.bf16.msra.mxu0 %v2955_v18  ;;  %v3021_v18 = vld [vmem:[#allocation6 + $0x2c0] ss:$16 sps:$4 sm:$0xff]  }
 0x1c7   :  { %1747 = vmatpush1.bf16.msra.mxu1 %v2958_v19  ;;  %1707 = vmatprep.subr.bf16.mxu0 %v2963_v20  ;;  %v3024_v19 = vld [vmem:[#allocation6 + $0x2c8] ss:$16 sps:$4 sm:$0xff]   ;;  %v3029_v20 = vld [vmem:[#allocation6 + $0x2e4] ss:$16 sps:$4 sm:$0xff]  }
 0x1c8   :  { %1748 = vmatprep.subr.bf16.mxu1 %v2966_v23  ;;  %v1364_v23 = vsel %vm1357_vm3, %v1360_v14, %v1363_v41  ;;  %v3036_v30 = vld [vmem:[#allocation7 + $0x180] sm:$0xff]  }
 0x1ca   :  { %1708 = vmatpush1.bf16.msra.mxu0 %v2961_v26  ;;  %v3027_v26 = vld [vmem:[#allocation6 + $0x2e0] ss:$16 sps:$4 sm:$0xff]  }
 0x1cb   :  { %1749 = vmatpush1.bf16.msra.mxu1 %v2964_v27  ;;  %1709 = vmatprep.subr.bf16.mxu0 %v2969_v28  ;;  %v1365_v27 = vsel %vm1355_vm14, nan, %v1364_v23  ;;  %v3030_v28 = vld [vmem:[#allocation6 + $0x2e8] ss:$16 sps:$4 sm:$0xff]  }
 0x1cc   :  { %1750 = vmatprep.subr.bf16.mxu1 %v2972_v58  ;;  %v1366_v22 = vpack.c.bf16 %v1365_v27, %v1365_v27  ;;  %v3034_v58 = vld [vmem:[#allocation7 + $0x1c0] sm:$0xff]  }
 0x1ce   :  { %1710 = vmatpush1.bf16.msra.mxu0 %v2967_v31  ;;  %v3037_v31 = vld [vmem:[#allocation7 + $0x148] sm:$0xff]  }
 0x1cf   :  { %1751 = vmatpush1.bf16.msra.mxu1 %v2970_v33  ;;  %1711 = vmatprep.subr.bf16.mxu0 %v2975_v35  ;;  %v3039_v33 = vld [vmem:[#allocation7 + $0x108] sm:$0xff]  }
 0x1d0   :  { %1752 = vmatprep.subr.bf16.mxu1 %v2978_v36  ;;  %v3040_v35 = vld [vmem:[#allocation7 + $0x188] sm:$0xff]   ;;  %v3041_v36 = vld [vmem:[#allocation7 + $0x150] sm:$0xff]  }
 0x1d2   :  { %1712 = vmatpush1.bf16.msra.mxu0 %v2973_v40  ;;  %v3044_v40 = vld [vmem:[#allocation7 + $0x190] sm:$0xff]  }
 0x1d3   :  { %1753 = vmatpush1.bf16.msra.mxu1 %v2976_v42  ;;  %1713 = vmatprep.subr.bf16.mxu0 %v2981_v34  ;;  %v3045_v42 = vld [vmem:[#allocation7 + $0x158] sm:$0xff]  }
 0x1d4   :  { %1754 = vmatprep.subr.bf16.mxu1 %v2984_v21  ;;  %v3046_v34 = vld [vmem:[#allocation7 + $0x1d8] sm:$0xff]  }
 0x1d5   :  { %v3048_v21 = vld [vmem:[#allocation7 + $0x198] sm:$0xff]  }
 0x1d6   :  { %1714 = vmatpush1.bf16.msra.mxu0 %v2979_v43  ;;  %v3049_v43 = vld [vmem:[#allocation7 + $0x160] sm:$0xff]  }
 0x1d7   :  { %1755 = vmatpush1.bf16.msra.mxu1 %v2982_v48  ;;  %1941 = vmatprep.subr.bf16.mxu0 %v2987_v50  ;;  %v3051_v48 = vld [vmem:[#allocation7 + $0x120] sm:$0xff]  }
 0x1d8   :  { %1982 = vmatprep.subr.bf16.mxu1 %v2990_v53  ;;  %v3052_v50 = vld [vmem:[#allocation7 + $0x1a0] sm:$0xff]   ;;  %v3053_v53 = vld [vmem:[#allocation7 + $0x168] sm:$0xff]  }
 0x1d9   :  { %1732 = vmatmul.mubr.bf16.vlgmr.msra.gmra.mrb[12].mxu0 %v1471_v55 }
 0x1da   :  { %1773 = vmatmul.mubr.bf16.vlgmr.msra.gmra.mrb[12].mxu1 %v1471_v55  ;;  %1942 = vmatpush1.bf16.msra.mxu0 %v2985_v56  ;;  %v3054_v55 = vld [vmem:[#allocation7 + $0x1e8] sm:$0xff]  }
 0x1db   :  { %1983 = vmatpush1.bf16.msra.mxu1 %v2988_v57  ;;  %1943 = vmatprep.subr.bf16.mxu0 %v2993_v59  ;;  %v3055_v56 = vld [vmem:[#allocation7 + $0x128] sm:$0xff]   ;;  %v3057_v59 = vld [vmem:[#allocation7 + $0x170] sm:$0xff]  }
 0x1dc   :  { %1984 = vmatprep.subr.bf16.mxu1 %v2996_v61  ;;  %1973 = vmatprep.mubr.bf16.mxu0 %v3224_v3  ;;  %v3056_v57 = vld [vmem:[#allocation7 + $0x1a8] sm:$0xff]   ;;  %v3058_v61 = vld [vmem:[#allocation7 + $0x1f0] sm:$0xff]  }
 0x1dd   :  { %2014 = vmatprep.mubr.bf16.mxu1 %v3224_v3  ;;  %v3009_v3 = vld [vmem:[#allocation6 + $0x280] ss:$16 sps:$4 sm:$0xff]  }
 0x1de   :  { %1944 = vmatpush1.bf16.msra.mxu0 %v2991_v63  ;;  %v3059_v63 = vld [vmem:[#allocation7 + $0x130] sm:$0xff]  }
 0x1df   :  { %1985 = vmatpush1.bf16.msra.mxu1 %v2994_v1  ;;  %1945 = vmatprep.subr.bf16.mxu0 %v2999_v4  ;;  %v3060_v1 = vld [vmem:[#allocation7 + $0x1b0] sm:$0xff]   ;;  %v3061_v4 = vld [vmem:[#allocation7 + $0x178] sm:$0xff]  }
 0x1e0   :  { %1986 = vmatprep.subr.bf16.mxu1 %v3002_v5  ;;  %v3062_v5 = vld [vmem:[#allocation7 + $0x1f8] sm:$0xff]  }
 0x1e2   :  { %1946 = vmatpush1.bf16.msra.mxu0 %v2997_v6  ;;  %v3063_v6 = vld [vmem:[#allocation7 + $0x138] sm:$0xff]  }
 0x1e3   :  { %1987 = vmatpush1.bf16.msra.mxu1 %v3000_v7  ;;  %1947 = vmatprep.subr.bf16.mxu0 %v3005_v38  ;;  %v3064_v7 = vld [vmem:[#allocation7 + $0x1b8] sm:$0xff]   ;;  %v977_v38 = vrot.slane %v3409_v45, 4 }
 0x1e4   :  { %1988 = vmatprep.subr.bf16.mxu1 %v3008_v2 }
 0x1e5   :  { %v979_v2 = vunpack.c.l.bf16 %v977_v38 }
 0x1e6   :  { %1948 = vmatpush1.bf16.msra.mxu0 %v3003_v10 }
 0x1e7   :  { %1989 = vmatpush1.bf16.msra.mxu1 %v3006_v54  ;;  %1949 = vmatprep.subr.bf16.mxu0 %v3011_v8  ;;  %v983_v54 = vrot.slane %v979_v2, %v3412_v46 }
 0x1e8   :  { %1990 = vmatprep.subr.bf16.mxu1 %v3014_v9 }
 0x1ea   :  { %1950 = vmatpush1.bf16.msra.mxu0 %v3009_v3 }
 0x1eb   :  { %1991 = vmatpush1.bf16.msra.mxu1 %v3012_v11  ;;  %1951 = vmatprep.subr.bf16.mxu0 %v3017_v62 }
 0x1ec   :  { %1992 = vmatprep.subr.bf16.mxu1 %v3020_v0 }
 0x1ee   :  { %1952 = vmatpush1.bf16.msra.mxu0 %v3015_v13 }
 0x1ef   :  { %1993 = vmatpush1.bf16.msra.mxu1 %v3018_v15  ;;  %1953 = vmatprep.subr.bf16.mxu0 %v3023_v16 }
 0x1f0   :  { %1994 = vmatprep.subr.bf16.mxu1 %v3026_v47 }
 0x1f2   :  { %1954 = vmatpush1.bf16.msra.mxu0 %v3021_v18 }
 0x1f3   :  { %1995 = vmatpush1.bf16.msra.mxu1 %v3024_v19  ;;  %1955 = vmatprep.subr.bf16.mxu0 %v3029_v20 }
 0x1f4   :  { %1996 = vmatprep.subr.bf16.mxu1 %v3032_v25 }
 0x1f6   :  { %1956 = vmatpush1.bf16.msra.mxu0 %v3027_v26  ;;  %v3487_v26 = vld [vmem:[%s3530_s2 + $0x5] sm:$0x1f]  ;;  %s3231_s2 = smov [#allocation10]  }
 0x1f7   :  { %1997 = vmatpush1.bf16.msra.mxu1 %v3030_v28  ;;  %2741 = vmatprep.subr.bf16.mxu0 %v3033_v24  ;;  %v2023_v27 = vunpack.c.l.bf16 %v3487_v26  ;;  %s2462_s30 = sshll.u32 %s3231_s2, 4  ;;  %s2463_s30 = int_to_ptr.vmem [resolvable:$true] %s2462_s30 }
 0x1f8   :  { %2763 = vmatprep.subr.bf16.mxu1 %v3034_v58  ;;  %s3163_s8 = scalar_lea.vmem %s2463_s30, 32  ;;  %p3168_p8 = scmp.lt.s32.totalorder %s2463_s30, %s2463_s30 }
 0x1f9   :  { %1974 = vmatmul.mubr.bf16.vlgmr.msra.gmra.mrb[16].mxu0 %v1366_v22  ;;  %v2028_v28 = vrot.slane %v2023_v27, %v3412_v46  ;;  %v2032_v24 = vrot.slane %v2023_v27, %v846_v51  ;;  %v2040_v58 = vrot.slane %v2023_v27, %v854_v52  ;;  %p3164_p7 = scmp.ne.s32.totalorder %s2463_s30, %s3163_s8  ;;  %p3169_p9 = scmp.lt.s32.totalorder %s3163_s8, %s3163_s8 }
 0x1fa   :  { %2015 = vmatmul.mubr.bf16.vlgmr.msra.gmra.mrb[16].mxu1 %v1366_v22  ;;  %2742 = vmatpush3.bf16.msra.mxu0 %v3035_v29  ;;  %v2036_v22 = vrot.slane %v2023_v27, %v850_v49 }
 0x1fb   :  { %2764 = vmatpush3.bf16.msra.mxu1 %v3036_v30  ;;  %2743 = vmatprep.subr.bf16.mxu0 %v3037_v31  ;;  %v2048_v29 = vrot.slane %v2028_v28, %v3412_v46  ;;  %p3170_p10 = por %p3169_p9, %p3168_p8 }
 0x1fc   :  { %2765 = vmatprep.subr.bf16.mxu1 %v3038_v32  ;;  %v2056_v31 = vrot.slane %v2036_v22, %v3412_v46  ;;  %v2052_v32 = vrot.slane %v2032_v24, %v3412_v46 }
 0x1fd   :  { %p3171_p11 = pnand %p3170_p10, %p3164_p7 }
 0x1fe   :  { %2744 = vmatpush3.bf16.msra.mxu0 %v3039_v33 }
 0x1ff   :  { %2766 = vmatpush3.bf16.msra.mxu1 %v3040_v35  ;;  %2745 = vmatprep.subr.bf16.mxu0 %v3041_v36 }
 0x200   :  { %2767 = vmatprep.subr.bf16.mxu1 %v3042_v37  ;;  %v2060_v37 = vrot.slane %v2040_v58, %v3412_v46 }
 0x202   :  { %2746 = vmatpush3.bf16.msra.mxu0 %v3043_v39 }
 0x203   :  { %2768 = vmatpush3.bf16.msra.mxu1 %v3044_v40  ;;  %2747 = vmatprep.subr.bf16.mxu0 %v3045_v42 }
 0x204   :  { %2769 = vmatprep.subr.bf16.mxu1 %v3046_v34 }
 0x206   :  { %2748 = vmatpush3.bf16.msra.mxu0 %v3047_v17 }
 0x207   :  { %2770 = vmatpush3.bf16.msra.mxu1 %v3048_v21  ;;  %2749 = vmatprep.subr.bf16.mxu0 %v3049_v43 }
 0x208   :  { %2771 = vmatprep.subr.bf16.mxu1 %v3050_v44 }
 0x20a   :  { %2750 = vmatpush3.bf16.msra.mxu0 %v3051_v48 }
 0x20b   :  { %2772 = vmatpush3.bf16.msra.mxu1 %v3052_v50  ;;  %2751 = vmatprep.subr.bf16.mxu0 %v3053_v53 }
 0x20c   :  { %2773 = vmatprep.subr.bf16.mxu1 %v3054_v55 }
 0x20e   :  { %2752 = vmatpush3.bf16.msra.mxu0 %v3055_v56 }
 0x20f   :  { %2774 = vmatpush3.bf16.msra.mxu1 %v3056_v57  ;;  %2753 = vmatprep.subr.bf16.mxu0 %v3057_v59 }
 0x210   :  { %2775 = vmatprep.subr.bf16.mxu1 %v3058_v61 }
 0x212   :  { %2754 = vmatpush3.bf16.msra.mxu0 %v3059_v63 }
 0x213   :  { %2776 = vmatpush3.bf16.msra.mxu1 %v3060_v1  ;;  %2755 = vmatprep.subr.bf16.mxu0 %v3061_v4 }
 0x214   :  { %2777 = vmatprep.subr.bf16.mxu1 %v3062_v5 }
 0x216   :  { %2756 = vmatpush3.bf16.msra.mxu0 %v3063_v6 }
 0x217   :  { %2778 = vmatpush3.bf16.msra.mxu1 %v3064_v7 }
 0x28c   :  { %v2713_v10 = vpop.f32.mrb[8].mxu0 }
 0x28d   :  { %v2735_v8 = vpop.f32.mrb[8].mxu1  ;;  %v2714_v9 = vpop.f32.mrb[9].mxu0 }
 0x28e   :  { %v2715_v60 = vadd.f32 %v2714_v9, %v2713_v10  ;;  %v2736_v3 = vpop.f32.mrb[9].mxu1  ;;  %v2716_v11 = vpop.f32.mrb[10].mxu0 }
 0x28f   :  { %v2737_v62 = vadd.f32 %v2736_v3, %v2735_v8  ;;  %v2738_v0 = vpop.f32.mrb[10].mxu1  ;;  %v2717_v13 = vpop.f32.mrb[11].mxu0 }
 0x290   :  { %v1211_v15 = vadd.f32 %v2715_v60, %v983_v54  ;;  %v2739_v16 = vpop.f32.mrb[11].mxu1  ;;  %v2163_v0 = vrot.slane %v3487_v26, 4 }
 0x292   :  { %v3482_v47 = vadd.f32 %v2737_v62, %v1211_v15  ;;  %v2165_v13 = vunpack.c.l.bf16 %v2163_v0 }
 0x294   :  { %v2169_v16 = vrot.slane %v2165_v13, %v3412_v46 }
 0x2ac   :  { %v1733_v14 = vpop.f32.mrb[12].mxu0 }
 0x2ad   :  { %v1774_v41 = vpop.f32.mrb[12].mxu1  ;;  %v1735_v18 = vpop.f32.mrb[13].mxu0 }
 0x2ae   :  { %v1776_v45 = vpop.f32.mrb[13].mxu1  ;;  %v1737_v19 = vpop.f32.mrb[14].mxu0 }
 0x2af   :  { %v1778_v20 = vpop.f32.mrb[14].mxu1  ;;  %v1738_v23 = vpop.f32.mrb[15].mxu0 }
 0x2b0   :  { %v1779_v25 = vpop.f32.mrb[15].mxu1 }
 0x2cc   :  { %v1975_v30 = vpop.f32.mrb[16].mxu0 }
 0x2cd   :  { %v1976_v33 = vadd.f32 %v1975_v30, %v1733_v14  ;;  %v2016_v35 = vpop.f32.mrb[16].mxu1  ;;  %v1977_v36 = vpop.f32.mrb[17].mxu0 }
 0x2ce   :  { %v2017_v39 = vadd.f32 %v2016_v35, %v1774_v41  ;;  %v1978_v49 = vadd.f32 %v1977_v36, %v1735_v18  ;;  %v2018_v40 = vpop.f32.mrb[17].mxu1  ;;  %v1979_v42 = vpop.f32.mrb[18].mxu0 }
 0x2cf   :  { %v2061_v51 = vadd.f32 %v2048_v29, %v1976_v33  ;;  %v2019_v34 = vadd.f32 %v2018_v40, %v1776_v45  ;;  %v2020_v12 = vpop.f32.mrb[18].mxu1  ;;  %v1980_v52 = vpop.f32.mrb[19].mxu0 }
 0x2d0   :  { %v2063_v17 = vadd.f32 %v2056_v31, %v2017_v39  ;;  %v2062_v21 = vadd.f32 %v2052_v32, %v1978_v49  ;;  %v2021_v43 = vpop.f32.mrb[19].mxu1 }
 0x2d1   :  { %v2661_v44 = vmul.f32 -1.442695, %v2061_v51  ;;  %v2064_v48 = vadd.f32 %v2060_v37, %v2019_v34 }
 0x2d2   :  { %v2663_v50 = vmul.f32 -1.442695, %v2063_v17  ;;  %v2662_v53 = vmul.f32 -1.442695, %v2062_v21 }
 0x2d3   :  { %3091 = vpow2.f32 %v2661_v44  ;;  %v2664_v55 = vmul.f32 -1.442695, %v2064_v48 }
 0x2d4   :  { %3093 = vpow2.f32 %v2663_v50 }
 0x2d5   :  { %3095 = vpow2.f32 %v2662_v53 }
 0x2d6   :  { %3097 = vpow2.f32 %v2664_v55 }
 0x2dd   :  { %v3092_v56 = vpop.eup %3091 }
 0x2de   :  { %v3094_v57 = vpop.eup %3093  ;;  %v2077_v59 = vadd.f32 1.0, %v3092_v56 }
 0x2df   :  { %v3096_v61 = vpop.eup %3095  ;;  %v2079_v63 = vadd.f32 1.0, %v3094_v57 }
 0x2e0   :  { %v3098_v1 = vpop.eup %3097  ;;  %3099 = vrcp.f32 %v2077_v59  ;;  %v2078_v4 = vadd.f32 1.0, %v3096_v61 }
 0x2e1   :  { %3101 = vrcp.f32 %v2079_v63  ;;  %v2080_v5 = vadd.f32 1.0, %v3098_v1 }
 0x2e2   :  { %3103 = vrcp.f32 %v2078_v4 }
 0x2e3   :  { %3105 = vrcp.f32 %v2080_v5 }
 0x2ea   :  { %v3100_v6 = vpop.eup %3099 }
 0x2eb   :  { %v3102_v7 = vpop.eup %3101  ;;  %v2089_v2 = vmul.f32 %v3100_v6, %v2061_v51 }
 0x2ec   :  { %v3104_v38 = vpop.eup %3103  ;;  %v2091_v54 = vmul.f32 %v3102_v7, %v2063_v17 }
 0x2ed   :  { %v3106_v10 = vpop.eup %3105  ;;  %v2090_v8 = vmul.f32 %v3104_v38, %v2062_v21  ;;  %v2093_v3 = vpack.c.bf16 %v2089_v2, %v2089_v2 }
 0x2ee   :  { %v2092_v9 = vmul.f32 %v3106_v10, %v2064_v48  ;;  %v2095_v62 = vpack.c.bf16 %v2091_v54, %v2091_v54 }
 0x2ef   :  { %v2094_v60 = vpack.c.bf16 %v2090_v8, %v2090_v8 }
 0x2f0   :  { %v2096_v11 = vpack.c.bf16 %v2092_v9, %v2092_v9 }
 0x2f1   :  { %2394 = vmatprep.mubr.bf16.mxu0 %v2094_v60 }
 0x2f2   :  { %2434 = vmatprep.mubr.bf16.mxu1 %v2096_v11  ;;  %2395 = vmatmul.mubr.bf16.vlgmr.msra.gmra.mrb[20].mxu0 %v2093_v3 }
 0x2f3   :  { %2435 = vmatmul.mubr.bf16.vlgmr.msra.gmra.mrb[20].mxu1 %v2095_v62 }
 0x3c5   :  { %v2757_v15 = vpop.f32.mrb[20].mxu0 }
 0x3c6   :  { %v2779_v14 = vpop.f32.mrb[20].mxu1  ;;  %v2758_v41 = vpop.f32.mrb[21].mxu0 }
 0x3c7   :  { %v2759_v18 = vadd.f32 %v2758_v41, %v2757_v15  ;;  %v2780_v45 = vpop.f32.mrb[21].mxu1  ;;  %v2760_v19 = vpop.f32.mrb[22].mxu0 }
 0x3c8   :  { %v2781_v20 = vadd.f32 %v2780_v45, %v2779_v14  ;;  %v2782_v23 = vpop.f32.mrb[22].mxu1  ;;  %v2761_v25 = vpop.f32.mrb[23].mxu0 }
 0x3c9   :  { %v2397_v27 = vadd.f32 %v2759_v18, %v2169_v16  ;;  %v2783_v28 = vpop.f32.mrb[23].mxu1 }
 0x3cb   :  { %v2437_v22 = vadd.f32 %v2781_v20, %v2397_v27 }
 0x3cd   :  { %2443 = vst [vmem:[#allocation10] sm:$0x3] %v2437_v22  ;;  %v2442_v26 = vadd.f32 %v2437_v22, %v3482_v47 }
 0x3ce   :  { %3174 = shalt.err (!%p3171_p11)
}
 0x3cf   :  { %s3175_s11 = scalar_lea.hbm %s3533_s5, 32 }
 0x3d0   :  { %p3176_p12 = scmp.ne.s32.totalorder %s3533_s5, %s3175_s11  ;;  %p3179_p13 = scmp.lt.u32.totalorder %s3175_s11, %s3533_s5 }
 0x3d2   :  { %p3181_p0 = pnand %p3179_p13, %p3176_p12 }
 0x3d4   :  { %3184 = shalt.err (!%p3181_p0)
}
 0x3d5   :  { %2465 = dma.vmem_to_hbm [thread:$0]  %s2463_s30, 32, %s3533_s5, [#allocation11]   ;;  %v2444_v46 = vmul.f32 0.5, %v2442_v26 }
 0x3d6   :  { %s3185_s18 = scalar_lea.vmem %s2453_s7, 32  ;;  %p3190_p2 = scmp.lt.s32.totalorder %s2453_s7, %s2453_s7 }
 0x3d7   :  { %2445 = vst [vmem:[#allocation9] sm:$0x3] %v2444_v46  ;;  %p3186_p1 = scmp.ne.s32.totalorder %s2453_s7, %s3185_s18  ;;  %p3191_p3 = scmp.lt.s32.totalorder %s3185_s18, %s3185_s18 }
 0x3d9   :  { %p3192_p4 = por %p3191_p3, %p3190_p2 }
 0x3db   :  { %p3193_p5 = pnand %p3192_p4, %p3186_p1 }
 0x3dd   :  { %3196 = shalt.err (!%p3193_p5)
}
 0x3de   :  { %s3197_s1 = scalar_lea.hbm %s3532_s4, 32 }
 0x3df   :  { %p3198_p6 = scmp.ne.s32.totalorder %s3532_s4, %s3197_s1  ;;  %p3201_p7 = scmp.lt.u32.totalorder %s3197_s1, %s3532_s4 }
 0x3e1   :  { %p3203_p8 = pnand %p3201_p7, %p3198_p6 }
 0x3e3   :  { %3206 = shalt.err (!%p3203_p8)
}
 0x3e4   :  { %2455 = dma.vmem_to_hbm [thread:$0]  %s2453_s7, 32, %s3532_s4, [#allocation4]  }
 0x3e5   :  { %3213 = dma.done.wait [#allocation4], 32  }
 0x3e6   :  { %3214 = vsyncadd [#allocation4], 4294967264 }
 0x3e7   :  { %3215 = dma.done.wait [#allocation11], 32  }
 0x3e8   :  { %3216 = vsyncadd [#allocation11], 4294967264 }
 0x3e9   :  { %2472 = vsyncpa [#allocation3], 1 }
 0x3ea   :  { %2473 = vsyncpa [#allocation8], 1 }
 0x3eb   :  { %2474 = vsyncpa [#allocation4], 1 }
 0x3ec   :  { %2475 = vsyncpa [#allocation11], 1 }
 0x3ed   :  { %2476 = vsyncpa [#allocation5], 1 }

</bundles_post_ra>
